<compile_context>
chip_gen: v7x
topology: tpu7x:2x2x1
jax: 0.10.0
libtpu: 0.0.40
codegen_flags: <defaults>
</compile_context>

<pallas_src>
import functools

import numpy as np
import jax
import jax.numpy as jnp
from jax import lax
from jax.experimental import pallas as pl
from jax.experimental.pallas import tpu as pltpu

NEG = -1e30          # finite stand-in for -inf in the log semiring (f32-safe)
FRAMES_PER_STEP = 8  # frames processed per fori_loop iteration (static unroll)


# ----------------------------------------------------------------------------
# Host-side replica of generate_fsa() (no k2): build the vote-filter automaton.
# ----------------------------------------------------------------------------
def _idx_to_seq(idx, length):
    return [int(x) for x in ('{0:0' + str(length) + 'b}').format(2 ** length - 1 - idx)]


def _ind_to_next(i, val, filter_size):
    return (2 * (i + 1) - 1 - val) % 2 ** filter_size


def build_vote_fsa(filter_size, majority_size):
    """Returns (num_states, preds, finals, arcs).

    preds[sym][j] = list of source states i with an arc i --sym--> j (weight 0).
    finals        = states with a (weight 0) arc to the super-final state.
    State 0 is the start state.
    """
    seq_ind_to_state = {}
    ind = 1
    for i in range(2 ** filter_size):
        if sum(_idx_to_seq(i, filter_size)) >= majority_size:
            seq_ind_to_state[i] = ind
            ind += 1
    num_states = ind
    arcs = {0: [], 1: []}
    arcs[1].append((0, 1))                        # '0 1 1 0.0'
    arcs[0].append((0, seq_ind_to_state[1]))      # '0 {state(seq_ind=1)} 0 0.0'
    finals = set()
    for seq_ind in sorted(seq_ind_to_state):
        s = seq_ind_to_state[seq_ind]
        for sym in (0, 1):
            nxt = _ind_to_next(seq_ind, sym, filter_size)
            if nxt in seq_ind_to_state:
                arcs[sym].append((s, seq_ind_to_state[nxt]))
        finals.add(s)                             # arc to super-final, symbol -1
    preds = {0: [[] for _ in range(num_states)], 1: [[] for _ in range(num_states)]}
    for sym in (0, 1):
        for src, dst in arcs[sym]:
            preds[sym][dst].append(src)
    return num_states, preds, sorted(finals), arcs


def _fsa_tables(filter_size, majority_size):
    """Static structures used by the kernel: per-destination (symbol, predecessor-set)
    terms, the distinct predecessor sets (shared LSE groups) and the final states."""
    num_states, preds, finals, _ = build_vote_fsa(filter_size, majority_size)
    dst_terms = []
    for j in range(num_states):
        terms = []
        for sym in (0, 1):
            if preds[sym][j]:
                terms.append((sym, tuple(sorted(preds[sym][j]))))
        dst_terms.append(tuple(terms))
    group_keys = tuple(sorted({key for terms in dst_terms for (_, key) in terms}))
    return num_states, tuple(dst_terms), group_keys, tuple(finals)


# ----------------------------------------------------------------------------
# Pallas kernel.
# ----------------------------------------------------------------------------
def _lse(vals):
    """Shared-max log-sum-exp over a static list of equal-shape arrays (inf-safe:
    arguments to exp are always <= 0, the summed value is always >= 1)."""
    if len(vals) == 1:
        return vals[0]
    m = vals[0]
    for v in vals[1:]:
        m = jnp.maximum(m, v)
    s = jnp.exp(vals[0] - m)
    for v in vals[1:]:
        s = s + jnp.exp(v - m)
    return m + jnp.log(s)


def _vote_filter_kernel(out_ref, tgt_ref, loss_ref, *, num_states, dst_terms,
                        group_keys, finals):
    # out_ref / tgt_ref: (T_pad, 8, Nl) f32, time-major with rows folded onto
    # (sublane, lane).  loss_ref: (1, 8, Nl) per-row partial loss of this tile.
    t_pad = out_ref.shape[0]
    row_shape = (out_ref.shape[1], out_ref.shape[2])

    neg = jnp.full(row_shape, NEG, dtype=jnp.float32)
    zero = jnp.zeros(row_shape, dtype=jnp.float32)
    init_alpha = tuple(zero if s == 0 else neg for s in range(num_states))

    def frame(p, tgt, carry):
        bce, acc, prev, alpha = carry

        log1m = jnp.log(1.0 - p)                 # shared: BCE term and sym-0 arc weight
        lp0 = jnp.maximum(log1m, NEG)            # clamp p==1 to a finite log-prob
        lp1 = jnp.maximum(jnp.log(p), NEG)       # clamp p==0 to a finite log-prob
        lp = (lp0, lp1)

        is_one = tgt > 0.5
        was_one = prev > 0.5
        onset = jnp.logical_and(is_one, jnp.logical_not(was_one))
        off = jnp.logical_and(was_one, jnp.logical_not(is_one))

        # BCE over target == 0 frames (log clamped at -100 exactly like torch.nn.BCELoss).
        bce = bce + jnp.where(is_one, 0.0, -jnp.maximum(log1m, -100.0))

        # A segment just ended -> add its total (log-semiring) score.
        seg = _lse([alpha[s] for s in finals])
        acc = acc + jnp.where(off, seg, 0.0)

        # A segment just started -> reset the forward scores to the start state.
        alpha = tuple(jnp.where(onset, ia, a) for ia, a in zip(init_alpha, alpha))

        # One frame of the forward recursion (only advanced where target == 1).
        # Distinct predecessor sets share one LSE; single-predecessor states are free.
        group_lse = {k: _lse([alpha[s] for s in k]) for k in group_keys}
        new_alpha = []
        for j in range(num_states):
            terms = dst_terms[j]
            if not terms:
                na = neg
            else:
                parts = [group_lse[key] + lp[sym] for sym, key in terms]
                na = parts[0]
                for extra in parts[1:]:
                    na = jnp.logaddexp(na, extra)
            new_alpha.append(jnp.where(is_one, na, alpha[j]))
        return bce, acc, tgt, tuple(new_alpha)

    def outer(b, carry):
        base = pl.multiple_of(b * FRAMES_PER_STEP, FRAMES_PER_STEP)
        ob = out_ref[pl.ds(base, FRAMES_PER_STEP)]   # (8, 8, Nl)
        tb = tgt_ref[pl.ds(base, FRAMES_PER_STEP)]   # (8, 8, Nl)
        for f in range(FRAMES_PER_STEP):             # static unroll
            carry = frame(ob[f], tb[f], carry)
        return carry

    carry0 = (zero, zero, zero, init_alpha)
    bce, acc, prev, alpha = lax.fori_loop(0, t_pad // FRAMES_PER_STEP, outer, carry0)

    # Flush a segment that runs up to the very last frame.
    acc = acc + jnp.where(prev > 0.5, _lse([alpha[s] for s in finals]), 0.0)

    loss_ref[0] = bce - acc


# ----------------------------------------------------------------------------
# Wrapper.
# ----------------------------------------------------------------------------
def _round_up(x, m):
    return (x + m - 1) // m * m


def vote_filter_loss(output, target, *, filter_size=3, majority_size=None,
                     filter_dim=-1, use_best=False, reduction='mean'):
    assert reduction in ('mean', 'sum')
    # TODO(synk): use_best=True (best-path / tropical-semiring scoring) not implemented.
    assert not use_best
    if majority_size is None:
        majority_size = filter_size // 2 + 1

    ndim = output.ndim
    fd = filter_dim % ndim
    last = output.shape[-1]       # matches torch: reshape uses the pre-transpose last dim
    perm = list(range(ndim))
    perm[fd], perm[-1] = perm[-1], perm[fd]
    o2 = jnp.transpose(output, perm).reshape(-1, last).astype(jnp.float32)   # (N, T)
    t2 = jnp.transpose(target, perm).reshape(-1, last).astype(jnp.float32)   # (N, T)
    n_rows, t_len = o2.shape
    numel = output.size

    num_states, dst_terms, group_keys, finals = _fsa_tables(filter_size, majority_size)

    # ---- tiling -------------------------------------------------------------
    t_pad = _round_up(t_len, FRAMES_PER_STEP)
    # Lane width per tile: 128 keeps all scan carries comfortably inside the vreg file;
    # bump to 256 only when T is short (per-grid-step overhead matters) and rows need it.
    nl_need = _round_up(max(1, -(-n_rows // 8)), 128)
    n_lanes = 256 if (t_pad <= 512 and nl_need >= 256) else 128
    rows_per_tile = 8 * n_lanes
    n_tiles = pl.cdiv(n_rows, rows_per_tile)
    n_pad = n_tiles * rows_per_tile

    # Pad rows with (p=0, target=0) -> zero BCE, no segments; pad time with target=0 so
    # trailing segments are closed inside the scan.
    o_p = jnp.pad(o2, ((0, n_pad - n_rows), (0, t_pad - t_len)))
    t_p = jnp.pad(t2, ((0, n_pad - n_rows), (0, t_pad - t_len)))

    # (N_pad, T) -> (tiles * T_pad, 8, Nl): one rearrangement that XLA fuses with the
    # transpose/reshape above (no second standalone HBM transpose pass like before).
    def to_tiles(x):
        return (x.reshape(n_tiles, 8, n_lanes, t_pad)
                 .transpose(0, 3, 1, 2)
                 .reshape(n_tiles * t_pad, 8, n_lanes))

    o_k = to_tiles(o_p)
    t_k = to_tiles(t_p)

    kernel = functools.partial(_vote_filter_kernel, num_states=num_states,
                               dst_terms=dst_terms, group_keys=group_keys,
                               finals=finals)

    # Advisory cost estimate (the kernel is transcendental-heavy).
    n_exp = sum(len(k) for k in group_keys if len(k) > 1)
    n_exp += len(finals) if len(finals) > 1 else 0
    n_log = 2 + sum(1 for k in group_keys if len(k) > 1) + (1 if len(finals) > 1 else 0)
    elems = n_tiles * t_pad * 8 * n_lanes
    cost = pl.CostEstimate(flops=12 * num_states * elems,
                           transcendentals=(n_exp + n_log) * elems,
                           bytes_accessed=int((o_k.size + t_k.size + n_pad) * 4))

    # 2 inputs x 2 pipeline buffers per tile, plus headroom.
    vmem_need = 2 * 2 * t_pad * 8 * n_lanes * 4 + (4 << 20)
    vmem_limit = int(min(96 << 20, max(32 << 20, vmem_need)))

    partial = pl.pallas_call(
        kernel,
        out_shape=jax.ShapeDtypeStruct((n_tiles, 8, n_lanes), jnp.float32),
        grid_spec=pl.GridSpec(
            grid=(n_tiles,),
            in_specs=[pl.BlockSpec((t_pad, 8, n_lanes), lambda g: (g, 0, 0)),
                      pl.BlockSpec((t_pad, 8, n_lanes), lambda g: (g, 0, 0))],
            out_specs=pl.BlockSpec((1, 8, n_lanes), lambda g: (g, 0, 0)),
        ),
        compiler_params=pltpu.CompilerParams(
            dimension_semantics=("parallel",),
            vmem_limit_bytes=vmem_limit),
        cost_estimate=cost,
    )(o_k, t_k)

    loss = jnp.sum(partial)
    if reduction == 'mean':
        loss = loss / numel
    return loss


# ----------------------------------------------------------------------------
# Brute-force numpy reference (enumerates all binary sequences per segment).
# ----------------------------------------------------------------------------
def _reference_loss(output, target, filter_size=3, majority_size=None, reduction='mean'):
    if majority_size is None:
        majority_size = filter_size // 2 + 1
    last = output.shape[-1]
    o = np.asarray(output, dtype=np.float64).reshape(-1, last)
    t = np.asarray(target, dtype=np.float64).reshape(-1, last)
    loss = float(np.sum(-np.maximum(np.log(1.0 - o), -100.0)[t == 0]))

    num_states, _, finals, arcs = build_vote_fsa(filter_size, majority_size)
    dead = num_states
    nxt = np.full((num_states + 1, 2), dead, dtype=np.int64)
    for sym in (0, 1):
        for src, dst in arcs[sym]:
            nxt[src, sym] = dst
    final_mask = np.zeros(num_states + 1, dtype=bool)
    for s in finals:
        final_mask[s] = True

    n_rows, T = t.shape
    for n in range(n_rows):
        padded = np.concatenate([[0.0], t[n], [0.0]])
        diff = padded[1:] - padded[:-1]
        onsets = np.nonzero(diff == 1)[0]
        offsets = np.nonzero(diff == -1)[0]
        for s0, e0 in zip(onsets, offsets):
            L = int(e0 - s0)
            p1 = o[n, s0:e0]
            seqs = ((np.arange(2 ** L)[:, None] >> np.arange(L)[None, :]) & 1)
            st = np.zeros(2 ** L, dtype=np.int64)
            for k in range(L):
                st = nxt[st, seqs[:, k]]
            accepted = final_mask[st]
            probs = np.prod(np.where(seqs == 1, p1[None, :], 1.0 - p1[None, :]), axis=1)
            loss -= float(np.log(np.sum(probs[accepted])))
    if reduction == 'mean':
        loss /= o.size
    return loss


if __name__ == "__main__":
    key = jax.random.PRNGKey(0)
    k1, k2 = jax.random.split(key)
    B, C, T = 2, 4, 13   # T not a multiple of 8: exercises the time-padding path
    output = jax.random.uniform(k1, (B, C, T), minval=0.05, maxval=0.95, dtype=jnp.float32)
    target = (jax.random.uniform(k2, (B, C, T)) > 0.5).astype(jnp.float32)

    loss = vote_filter_loss(output, target)
    loss = jax.block_until_ready(loss)

    ref = _reference_loss(np.asarray(output), np.asarray(target))
    assert np.allclose(float(loss), ref, rtol=5e-3, atol=1e-3), (float(loss), ref)
    print("KERNEL_OK")
</pallas_src>

<mosaic_0001>
module attributes {stable_mosaic.version = 11 : i64} {
  func.func @_vote_filter_kernel(%arg0: i32, %arg1: memref<16x8x128xf32, #tpu.memory_space<vmem>>, %arg2: memref<16x8x128xf32, #tpu.memory_space<vmem>>, %arg3: memref<1x8x128xf32, #tpu.memory_space<vmem>>) attributes {dimension_semantics = [#tpu.dimension_semantics<parallel>], iteration_bounds = array<i64: 1>, scalar_prefetch = 0 : i64, scratch_operands = 0 : i64, tpu.core_type = #tpu.core_type<tc>, window_params = [{transform_indices = @transform_0, window_bounds = array<i64: 16, 8, 128>}, {transform_indices = @transform_1, window_bounds = array<i64: 16, 8, 128>}, {transform_indices = @transform_2, window_bounds = array<i64: 1, 8, 128>}]} {
    %cst = arith.constant -1.000000e+30 : f32
    %0 = vector.broadcast %cst : f32 to vector<8x128xf32>
    %cst_0 = arith.constant 0.000000e+00 : f32
    %1 = vector.broadcast %cst_0 : f32 to vector<8x128xf32>
    %c0_i32 = arith.constant 0 : i32
    %c2_i32 = arith.constant 2 : i32
    %2 = arith.addi %c0_i32, %c2_i32 : i32
    %c1_i32 = arith.constant 1 : i32
    %3:8 = scf.for %arg4 = %c0_i32 to %2 step %c1_i32 iter_args(%arg5 = %1, %arg6 = %1, %arg7 = %1, %arg8 = %1, %arg9 = %0, %arg10 = %0, %arg11 = %0, %arg12 = %0) -> (vector<8x128xf32>, vector<8x128xf32>, vector<8x128xf32>, vector<8x128xf32>, vector<8x128xf32>, vector<8x128xf32>, vector<8x128xf32>, vector<8x128xf32>)  : i32 {
      %c8_i32 = arith.constant 8 : i32
      %29 = arith.muli %arg4, %c8_i32 : i32
      %30 = tpu.assume_multiple %29, 8 : i32
      %31 = arith.index_cast %30 : i32 to index
      %c0_6 = arith.constant 0 : index
      %c0_7 = arith.constant 0 : index
      %32 = vector.load %arg1[%31, %c0_6, %c0_7] : memref<16x8x128xf32, #tpu.memory_space<vmem>>, vector<8x8x128xf32>
      %33 = arith.index_cast %30 : i32 to index
      %c0_8 = arith.constant 0 : index
      %c0_9 = arith.constant 0 : index
      %34 = vector.load %arg2[%33, %c0_8, %c0_9] : memref<16x8x128xf32, #tpu.memory_space<vmem>>, vector<8x8x128xf32>
      %35 = vector.extract_strided_slice %32 {offsets = [0, 0, 0], sizes = [1, 8, 128], strides = [1, 1, 1]} : vector<8x8x128xf32> to vector<1x8x128xf32>
      %36 = vector.shape_cast %35 : vector<1x8x128xf32> to vector<8x128xf32>
      %37 = vector.extract_strided_slice %34 {offsets = [0, 0, 0], sizes = [1, 8, 128], strides = [1, 1, 1]} : vector<8x8x128xf32> to vector<1x8x128xf32>
      %38 = vector.shape_cast %37 : vector<1x8x128xf32> to vector<8x128xf32>
      %cst_10 = arith.constant 1.000000e+00 : f32
      %39 = vector.broadcast %cst_10 : f32 to vector<8x128xf32>
      %40 = arith.subf %39, %36 : vector<8x128xf32>
      %41 = math.log %40 : vector<8x128xf32>
      %cst_11 = arith.constant -1.000000e+30 : f32
      %42 = vector.broadcast %cst_11 : f32 to vector<8x128xf32>
      %43 = arith.maximumf %41, %42 : vector<8x128xf32>
      %44 = math.log %36 : vector<8x128xf32>
      %cst_12 = arith.constant -1.000000e+30 : f32
      %45 = vector.broadcast %cst_12 : f32 to vector<8x128xf32>
      %46 = arith.maximumf %44, %45 : vector<8x128xf32>
      %cst_13 = arith.constant 5.000000e-01 : f32
      %47 = vector.broadcast %cst_13 : f32 to vector<8x128xf32>
      %48 = arith.cmpf ogt, %38, %47 : vector<8x128xf32>
      %cst_14 = arith.constant 5.000000e-01 : f32
      %49 = vector.broadcast %cst_14 : f32 to vector<8x128xf32>
      %50 = arith.cmpf ogt, %arg7, %49 : vector<8x128xf32>
      %cst_15 = arith.constant dense<true> : vector<8x128xi1>
      %51 = arith.xori %50, %cst_15 : vector<8x128xi1>
      %52 = arith.andi %48, %51 : vector<8x128xi1>
      %cst_16 = arith.constant dense<true> : vector<8x128xi1>
      %53 = arith.xori %48, %cst_16 : vector<8x128xi1>
      %54 = arith.andi %50, %53 : vector<8x128xi1>
      %cst_17 = arith.constant -1.000000e+02 : f32
      %55 = vector.broadcast %cst_17 : f32 to vector<8x128xf32>
      %56 = arith.maximumf %41, %55 : vector<8x128xf32>
      %cst_18 = arith.constant 0.000000e+00 : f32
      %57 = vector.broadcast %cst_18 : f32 to vector<8x128xf32>
      %58 = arith.subf %57, %56 : vector<8x128xf32>
      %cst_19 = arith.constant 0.000000e+00 : f32
      %59 = vector.broadcast %cst_19 : f32 to vector<8x128xf32>
      %60 = arith.select %48, %59, %58 : vector<8x128xi1>, vector<8x128xf32>
      %61 = arith.addf %arg5, %60 : vector<8x128xf32>
      %62 = arith.maximumf %arg9, %arg10 : vector<8x128xf32>
      %63 = arith.maximumf %62, %arg11 : vector<8x128xf32>
      %64 = arith.maximumf %63, %arg12 : vector<8x128xf32>
      %65 = arith.subf %arg9, %64 : vector<8x128xf32>
      %66 = math.exp %65 : vector<8x128xf32>
      %67 = arith.subf %arg10, %64 : vector<8x128xf32>
      %68 = math.exp %67 : vector<8x128xf32>
      %69 = arith.addf %66, %68 : vector<8x128xf32>
      %70 = arith.subf %arg11, %64 : vector<8x128xf32>
      %71 = math.exp %70 : vector<8x128xf32>
      %72 = arith.addf %69, %71 : vector<8x128xf32>
      %73 = arith.subf %arg12, %64 : vector<8x128xf32>
      %74 = math.exp %73 : vector<8x128xf32>
      %75 = arith.addf %72, %74 : vector<8x128xf32>
      %76 = math.log %75 : vector<8x128xf32>
      %77 = arith.addf %64, %76 : vector<8x128xf32>
      %cst_20 = arith.constant 0.000000e+00 : f32
      %78 = vector.broadcast %cst_20 : f32 to vector<8x128xf32>
      %79 = arith.select %54, %77, %78 : vector<8x128xi1>, vector<8x128xf32>
      %80 = arith.addf %arg6, %79 : vector<8x128xf32>
      %81 = arith.select %52, %1, %arg8 : vector<8x128xi1>, vector<8x128xf32>
      %82 = arith.select %52, %0, %arg9 : vector<8x128xi1>, vector<8x128xf32>
      %83 = arith.select %52, %0, %arg10 : vector<8x128xi1>, vector<8x128xf32>
      %84 = arith.select %52, %0, %arg11 : vector<8x128xi1>, vector<8x128xf32>
      %85 = arith.select %52, %0, %arg12 : vector<8x128xi1>, vector<8x128xf32>
      %86 = arith.maximumf %81, %82 : vector<8x128xf32>
      %87 = arith.maximumf %86, %85 : vector<8x128xf32>
      %88 = arith.subf %81, %87 : vector<8x128xf32>
      %89 = math.exp %88 : vector<8x128xf32>
      %90 = arith.subf %82, %87 : vector<8x128xf32>
      %91 = math.exp %90 : vector<8x128xf32>
      %92 = arith.addf %89, %91 : vector<8x128xf32>
      %93 = arith.subf %85, %87 : vector<8x128xf32>
      %94 = math.exp %93 : vector<8x128xf32>
      %95 = arith.addf %92, %94 : vector<8x128xf32>
      %96 = math.log %95 : vector<8x128xf32>
      %97 = arith.addf %87, %96 : vector<8x128xf32>
      %98 = arith.select %48, %0, %81 : vector<8x128xi1>, vector<8x128xf32>
      %99 = arith.addf %97, %46 : vector<8x128xf32>
      %100 = arith.select %48, %99, %82 : vector<8x128xi1>, vector<8x128xf32>
      %101 = arith.addf %97, %43 : vector<8x128xf32>
      %102 = arith.select %48, %101, %83 : vector<8x128xi1>, vector<8x128xf32>
      %103 = arith.addf %83, %46 : vector<8x128xf32>
      %104 = arith.select %48, %103, %84 : vector<8x128xi1>, vector<8x128xf32>
      %105 = arith.addf %84, %46 : vector<8x128xf32>
      %106 = arith.select %48, %105, %85 : vector<8x128xi1>, vector<8x128xf32>
      %107 = vector.extract_strided_slice %32 {offsets = [1, 0, 0], sizes = [1, 8, 128], strides = [1, 1, 1]} : vector<8x8x128xf32> to vector<1x8x128xf32>
      %108 = vector.shape_cast %107 : vector<1x8x128xf32> to vector<8x128xf32>
      %109 = vector.extract_strided_slice %34 {offsets = [1, 0, 0], sizes = [1, 8, 128], strides = [1, 1, 1]} : vector<8x8x128xf32> to vector<1x8x128xf32>
      %110 = vector.shape_cast %109 : vector<1x8x128xf32> to vector<8x128xf32>
      %cst_21 = arith.constant 1.000000e+00 : f32
      %111 = vector.broadcast %cst_21 : f32 to vector<8x128xf32>
      %112 = arith.subf %111, %108 : vector<8x128xf32>
      %113 = math.log %112 : vector<8x128xf32>
      %cst_22 = arith.constant -1.000000e+30 : f32
      %114 = vector.broadcast %cst_22 : f32 to vector<8x128xf32>
      %115 = arith.maximumf %113, %114 : vector<8x128xf32>
      %116 = math.log %108 : vector<8x128xf32>
      %cst_23 = arith.constant -1.000000e+30 : f32
      %117 = vector.broadcast %cst_23 : f32 to vector<8x128xf32>
      %118 = arith.maximumf %116, %117 : vector<8x128xf32>
      %cst_24 = arith.constant 5.000000e-01 : f32
      %119 = vector.broadcast %cst_24 : f32 to vector<8x128xf32>
      %120 = arith.cmpf ogt, %110, %119 : vector<8x128xf32>
      %cst_25 = arith.constant 5.000000e-01 : f32
      %121 = vector.broadcast %cst_25 : f32 to vector<8x128xf32>
      %122 = arith.cmpf ogt, %38, %121 : vector<8x128xf32>
      %cst_26 = arith.constant dense<true> : vector<8x128xi1>
      %123 = arith.xori %122, %cst_26 : vector<8x128xi1>
      %124 = arith.andi %120, %123 : vector<8x128xi1>
      %cst_27 = arith.constant dense<true> : vector<8x128xi1>
      %125 = arith.xori %120, %cst_27 : vector<8x128xi1>
      %126 = arith.andi %122, %125 : vector<8x128xi1>
      %cst_28 = arith.constant -1.000000e+02 : f32
      %127 = vector.broadcast %cst_28 : f32 to vector<8x128xf32>
      %128 = arith.maximumf %113, %127 : vector<8x128xf32>
      %cst_29 = arith.constant 0.000000e+00 : f32
      %129 = vector.broadcast %cst_29 : f32 to vector<8x128xf32>
      %130 = arith.subf %129, %128 : vector<8x128xf32>
      %cst_30 = arith.constant 0.000000e+00 : f32
      %131 = vector.broadcast %cst_30 : f32 to vector<8x128xf32>
      %132 = arith.select %120, %131, %130 : vector<8x128xi1>, vector<8x128xf32>
      %133 = arith.addf %61, %132 : vector<8x128xf32>
      %134 = arith.maximumf %100, %102 : vector<8x128xf32>
      %135 = arith.maximumf %134, %104 : vector<8x128xf32>
      %136 = arith.maximumf %135, %106 : vector<8x128xf32>
      %137 = arith.subf %100, %136 : vector<8x128xf32>
      %138 = math.exp %137 : vector<8x128xf32>
      %139 = arith.subf %102, %136 : vector<8x128xf32>
      %140 = math.exp %139 : vector<8x128xf32>
      %141 = arith.addf %138, %140 : vector<8x128xf32>
      %142 = arith.subf %104, %136 : vector<8x128xf32>
      %143 = math.exp %142 : vector<8x128xf32>
      %144 = arith.addf %141, %143 : vector<8x128xf32>
      %145 = arith.subf %106, %136 : vector<8x128xf32>
      %146 = math.exp %145 : vector<8x128xf32>
      %147 = arith.addf %144, %146 : vector<8x128xf32>
      %148 = math.log %147 : vector<8x128xf32>
      %149 = arith.addf %136, %148 : vector<8x128xf32>
      %cst_31 = arith.constant 0.000000e+00 : f32
      %150 = vector.broadcast %cst_31 : f32 to vector<8x128xf32>
      %151 = arith.select %126, %149, %150 : vector<8x128xi1>, vector<8x128xf32>
      %152 = arith.addf %80, %151 : vector<8x128xf32>
      %153 = arith.select %124, %1, %98 : vector<8x128xi1>, vector<8x128xf32>
      %154 = arith.select %124, %0, %100 : vector<8x128xi1>, vector<8x128xf32>
      %155 = arith.select %124, %0, %102 : vector<8x128xi1>, vector<8x128xf32>
      %156 = arith.select %124, %0, %104 : vector<8x128xi1>, vector<8x128xf32>
      %157 = arith.select %124, %0, %106 : vector<8x128xi1>, vector<8x128xf32>
      %158 = arith.maximumf %153, %154 : vector<8x128xf32>
      %159 = arith.maximumf %158, %157 : vector<8x128xf32>
      %160 = arith.subf %153, %159 : vector<8x128xf32>
      %161 = math.exp %160 : vector<8x128xf32>
      %162 = arith.subf %154, %159 : vector<8x128xf32>
      %163 = math.exp %162 : vector<8x128xf32>
      %164 = arith.addf %161, %163 : vector<8x128xf32>
      %165 = arith.subf %157, %159 : vector<8x128xf32>
      %166 = math.exp %165 : vector<8x128xf32>
      %167 = arith.addf %164, %166 : vector<8x128xf32>
      %168 = math.log %167 : vector<8x128xf32>
      %169 = arith.addf %159, %168 : vector<8x128xf32>
      %170 = arith.select %120, %0, %153 : vector<8x128xi1>, vector<8x128xf32>
      %171 = arith.addf %169, %118 : vector<8x128xf32>
      %172 = arith.select %120, %171, %154 : vector<8x128xi1>, vector<8x128xf32>
      %173 = arith.addf %169, %115 : vector<8x128xf32>
      %174 = arith.select %120, %173, %155 : vector<8x128xi1>, vector<8x128xf32>
      %175 = arith.addf %155, %118 : vector<8x128xf32>
      %176 = arith.select %120, %175, %156 : vector<8x128xi1>, vector<8x128xf32>
      %177 = arith.addf %156, %118 : vector<8x128xf32>
      %178 = arith.select %120, %177, %157 : vector<8x128xi1>, vector<8x128xf32>
      %179 = vector.extract_strided_slice %32 {offsets = [2, 0, 0], sizes = [1, 8, 128], strides = [1, 1, 1]} : vector<8x8x128xf32> to vector<1x8x128xf32>
      %180 = vector.shape_cast %179 : vector<1x8x128xf32> to vector<8x128xf32>
      %181 = vector.extract_strided_slice %34 {offsets = [2, 0, 0], sizes = [1, 8, 128], strides = [1, 1, 1]} : vector<8x8x128xf32> to vector<1x8x128xf32>
      %182 = vector.shape_cast %181 : vector<1x8x128xf32> to vector<8x128xf32>
      %cst_32 = arith.constant 1.000000e+00 : f32
      %183 = vector.broadcast %cst_32 : f32 to vector<8x128xf32>
      %184 = arith.subf %183, %180 : vector<8x128xf32>
      %185 = math.log %184 : vector<8x128xf32>
      %cst_33 = arith.constant -1.000000e+30 : f32
      %186 = vector.broadcast %cst_33 : f32 to vector<8x128xf32>
      %187 = arith.maximumf %185, %186 : vector<8x128xf32>
      %188 = math.log %180 : vector<8x128xf32>
      %cst_34 = arith.constant -1.000000e+30 : f32
      %189 = vector.broadcast %cst_34 : f32 to vector<8x128xf32>
      %190 = arith.maximumf %188, %189 : vector<8x128xf32>
      %cst_35 = arith.constant 5.000000e-01 : f32
      %191 = vector.broadcast %cst_35 : f32 to vector<8x128xf32>
      %192 = arith.cmpf ogt, %182, %191 : vector<8x128xf32>
      %cst_36 = arith.constant 5.000000e-01 : f32
      %193 = vector.broadcast %cst_36 : f32 to vector<8x128xf32>
      %194 = arith.cmpf ogt, %110, %193 : vector<8x128xf32>
      %cst_37 = arith.constant dense<true> : vector<8x128xi1>
      %195 = arith.xori %194, %cst_37 : vector<8x128xi1>
      %196 = arith.andi %192, %195 : vector<8x128xi1>
      %cst_38 = arith.constant dense<true> : vector<8x128xi1>
      %197 = arith.xori %192, %cst_38 : vector<8x128xi1>
      %198 = arith.andi %194, %197 : vector<8x128xi1>
      %cst_39 = arith.constant -1.000000e+02 : f32
      %199 = vector.broadcast %cst_39 : f32 to vector<8x128xf32>
      %200 = arith.maximumf %185, %199 : vector<8x128xf32>
      %cst_40 = arith.constant 0.000000e+00 : f32
      %201 = vector.broadcast %cst_40 : f32 to vector<8x128xf32>
      %202 = arith.subf %201, %200 : vector<8x128xf32>
      %cst_41 = arith.constant 0.000000e+00 : f32
      %203 = vector.broadcast %cst_41 : f32 to vector<8x128xf32>
      %204 = arith.select %192, %203, %202 : vector<8x128xi1>, vector<8x128xf32>
      %205 = arith.addf %133, %204 : vector<8x128xf32>
      %206 = arith.maximumf %172, %174 : vector<8x128xf32>
      %207 = arith.maximumf %206, %176 : vector<8x128xf32>
      %208 = arith.maximumf %207, %178 : vector<8x128xf32>
      %209 = arith.subf %172, %208 : vector<8x128xf32>
      %210 = math.exp %209 : vector<8x128xf32>
      %211 = arith.subf %174, %208 : vector<8x128xf32>
      %212 = math.exp %211 : vector<8x128xf32>
      %213 = arith.addf %210, %212 : vector<8x128xf32>
      %214 = arith.subf %176, %208 : vector<8x128xf32>
      %215 = math.exp %214 : vector<8x128xf32>
      %216 = arith.addf %213, %215 : vector<8x128xf32>
      %217 = arith.subf %178, %208 : vector<8x128xf32>
      %218 = math.exp %217 : vector<8x128xf32>
      %219 = arith.addf %216, %218 : vector<8x128xf32>
      %220 = math.log %219 : vector<8x128xf32>
      %221 = arith.addf %208, %220 : vector<8x128xf32>
      %cst_42 = arith.constant 0.000000e+00 : f32
      %222 = vector.broadcast %cst_42 : f32 to vector<8x128xf32>
      %223 = arith.select %198, %221, %222 : vector<8x128xi1>, vector<8x128xf32>
      %224 = arith.addf %152, %223 : vector<8x128xf32>
      %225 = arith.select %196, %1, %170 : vector<8x128xi1>, vector<8x128xf32>
      %226 = arith.select %196, %0, %172 : vector<8x128xi1>, vector<8x128xf32>
      %227 = arith.select %196, %0, %174 : vector<8x128xi1>, vector<8x128xf32>
      %228 = arith.select %196, %0, %176 : vector<8x128xi1>, vector<8x128xf32>
      %229 = arith.select %196, %0, %178 : vector<8x128xi1>, vector<8x128xf32>
      %230 = arith.maximumf %225, %226 : vector<8x128xf32>
      %231 = arith.maximumf %230, %229 : vector<8x128xf32>
      %232 = arith.subf %225, %231 : vector<8x128xf32>
      %233 = math.exp %232 : vector<8x128xf32>
      %234 = arith.subf %226, %231 : vector<8x128xf32>
      %235 = math.exp %234 : vector<8x128xf32>
      %236 = arith.addf %233, %235 : vector<8x128xf32>
      %237 = arith.subf %229, %231 : vector<8x128xf32>
      %238 = math.exp %237 : vector<8x128xf32>
      %239 = arith.addf %236, %238 : vector<8x128xf32>
      %240 = math.log %239 : vector<8x128xf32>
      %241 = arith.addf %231, %240 : vector<8x128xf32>
      %242 = arith.select %192, %0, %225 : vector<8x128xi1>, vector<8x128xf32>
      %243 = arith.addf %241, %190 : vector<8x128xf32>
      %244 = arith.select %192, %243, %226 : vector<8x128xi1>, vector<8x128xf32>
      %245 = arith.addf %241, %187 : vector<8x128xf32>
      %246 = arith.select %192, %245, %227 : vector<8x128xi1>, vector<8x128xf32>
      %247 = arith.addf %227, %190 : vector<8x128xf32>
      %248 = arith.select %192, %247, %228 : vector<8x128xi1>, vector<8x128xf32>
      %249 = arith.addf %228, %190 : vector<8x128xf32>
      %250 = arith.select %192, %249, %229 : vector<8x128xi1>, vector<8x128xf32>
      %251 = vector.extract_strided_slice %32 {offsets = [3, 0, 0], sizes = [1, 8, 128], strides = [1, 1, 1]} : vector<8x8x128xf32> to vector<1x8x128xf32>
      %252 = vector.shape_cast %251 : vector<1x8x128xf32> to vector<8x128xf32>
      %253 = vector.extract_strided_slice %34 {offsets = [3, 0, 0], sizes = [1, 8, 128], strides = [1, 1, 1]} : vector<8x8x128xf32> to vector<1x8x128xf32>
      %254 = vector.shape_cast %253 : vector<1x8x128xf32> to vector<8x128xf32>
      %cst_43 = arith.constant 1.000000e+00 : f32
      %255 = vector.broadcast %cst_43 : f32 to vector<8x128xf32>
      %256 = arith.subf %255, %252 : vector<8x128xf32>
      %257 = math.log %256 : vector<8x128xf32>
      %cst_44 = arith.constant -1.000000e+30 : f32
      %258 = vector.broadcast %cst_44 : f32 to vector<8x128xf32>
      %259 = arith.maximumf %257, %258 : vector<8x128xf32>
      %260 = math.log %252 : vector<8x128xf32>
      %cst_45 = arith.constant -1.000000e+30 : f32
      %261 = vector.broadcast %cst_45 : f32 to vector<8x128xf32>
      %262 = arith.maximumf %260, %261 : vector<8x128xf32>
      %cst_46 = arith.constant 5.000000e-01 : f32
      %263 = vector.broadcast %cst_46 : f32 to vector<8x128xf32>
      %264 = arith.cmpf ogt, %254, %263 : vector<8x128xf32>
      %cst_47 = arith.constant 5.000000e-01 : f32
      %265 = vector.broadcast %cst_47 : f32 to vector<8x128xf32>
      %266 = arith.cmpf ogt, %182, %265 : vector<8x128xf32>
      %cst_48 = arith.constant dense<true> : vector<8x128xi1>
      %267 = arith.xori %266, %cst_48 : vector<8x128xi1>
      %268 = arith.andi %264, %267 : vector<8x128xi1>
      %cst_49 = arith.constant dense<true> : vector<8x128xi1>
      %269 = arith.xori %264, %cst_49 : vector<8x128xi1>
      %270 = arith.andi %266, %269 : vector<8x128xi1>
      %cst_50 = arith.constant -1.000000e+02 : f32
      %271 = vector.broadcast %cst_50 : f32 to vector<8x128xf32>
      %272 = arith.maximumf %257, %271 : vector<8x128xf32>
      %cst_51 = arith.constant 0.000000e+00 : f32
      %273 = vector.broadcast %cst_51 : f32 to vector<8x128xf32>
      %274 = arith.subf %273, %272 : vector<8x128xf32>
      %cst_52 = arith.constant 0.000000e+00 : f32
      %275 = vector.broadcast %cst_52 : f32 to vector<8x128xf32>
      %276 = arith.select %264, %275, %274 : vector<8x128xi1>, vector<8x128xf32>
      %277 = arith.addf %205, %276 : vector<8x128xf32>
      %278 = arith.maximumf %244, %246 : vector<8x128xf32>
      %279 = arith.maximumf %278, %248 : vector<8x128xf32>
      %280 = arith.maximumf %279, %250 : vector<8x128xf32>
      %281 = arith.subf %244, %280 : vector<8x128xf32>
      %282 = math.exp %281 : vector<8x128xf32>
      %283 = arith.subf %246, %280 : vector<8x128xf32>
      %284 = math.exp %283 : vector<8x128xf32>
      %285 = arith.addf %282, %284 : vector<8x128xf32>
      %286 = arith.subf %248, %280 : vector<8x128xf32>
      %287 = math.exp %286 : vector<8x128xf32>
      %288 = arith.addf %285, %287 : vector<8x128xf32>
      %289 = arith.subf %250, %280 : vector<8x128xf32>
      %290 = math.exp %289 : vector<8x128xf32>
      %291 = arith.addf %288, %290 : vector<8x128xf32>
      %292 = math.log %291 : vector<8x128xf32>
      %293 = arith.addf %280, %292 : vector<8x128xf32>
      %cst_53 = arith.constant 0.000000e+00 : f32
      %294 = vector.broadcast %cst_53 : f32 to vector<8x128xf32>
      %295 = arith.select %270, %293, %294 : vector<8x128xi1>, vector<8x128xf32>
      %296 = arith.addf %224, %295 : vector<8x128xf32>
      %297 = arith.select %268, %1, %242 : vector<8x128xi1>, vector<8x128xf32>
      %298 = arith.select %268, %0, %244 : vector<8x128xi1>, vector<8x128xf32>
      %299 = arith.select %268, %0, %246 : vector<8x128xi1>, vector<8x128xf32>
      %300 = arith.select %268, %0, %248 : vector<8x128xi1>, vector<8x128xf32>
      %301 = arith.select %268, %0, %250 : vector<8x128xi1>, vector<8x128xf32>
      %302 = arith.maximumf %297, %298 : vector<8x128xf32>
      %303 = arith.maximumf %302, %301 : vector<8x128xf32>
      %304 = arith.subf %297, %303 : vector<8x128xf32>
      %305 = math.exp %304 : vector<8x128xf32>
      %306 = arith.subf %298, %303 : vector<8x128xf32>
      %307 = math.exp %306 : vector<8x128xf32>
      %308 = arith.addf %305, %307 : vector<8x128xf32>
      %309 = arith.subf %301, %303 : vector<8x128xf32>
      %310 = math.exp %309 : vector<8x128xf32>
      %311 = arith.addf %308, %310 : vector<8x128xf32>
      %312 = math.log %311 : vector<8x128xf32>
      %313 = arith.addf %303, %312 : vector<8x128xf32>
      %314 = arith.select %264, %0, %297 : vector<8x128xi1>, vector<8x128xf32>
      %315 = arith.addf %313, %262 : vector<8x128xf32>
      %316 = arith.select %264, %315, %298 : vector<8x128xi1>, vector<8x128xf32>
      %317 = arith.addf %313, %259 : vector<8x128xf32>
      %318 = arith.select %264, %317, %299 : vector<8x128xi1>, vector<8x128xf32>
      %319 = arith.addf %299, %262 : vector<8x128xf32>
      %320 = arith.select %264, %319, %300 : vector<8x128xi1>, vector<8x128xf32>
      %321 = arith.addf %300, %262 : vector<8x128xf32>
      %322 = arith.select %264, %321, %301 : vector<8x128xi1>, vector<8x128xf32>
      %323 = vector.extract_strided_slice %32 {offsets = [4, 0, 0], sizes = [1, 8, 128], strides = [1, 1, 1]} : vector<8x8x128xf32> to vector<1x8x128xf32>
      %324 = vector.shape_cast %323 : vector<1x8x128xf32> to vector<8x128xf32>
      %325 = vector.extract_strided_slice %34 {offsets = [4, 0, 0], sizes = [1, 8, 128], strides = [1, 1, 1]} : vector<8x8x128xf32> to vector<1x8x128xf32>
      %326 = vector.shape_cast %325 : vector<1x8x128xf32> to vector<8x128xf32>
      %cst_54 = arith.constant 1.000000e+00 : f32
      %327 = vector.broadcast %cst_54 : f32 to vector<8x128xf32>
      %328 = arith.subf %327, %324 : vector<8x128xf32>
      %329 = math.log %328 : vector<8x128xf32>
      %cst_55 = arith.constant -1.000000e+30 : f32
      %330 = vector.broadcast %cst_55 : f32 to vector<8x128xf32>
      %331 = arith.maximumf %329, %330 : vector<8x128xf32>
      %332 = math.log %324 : vector<8x128xf32>
      %cst_56 = arith.constant -1.000000e+30 : f32
      %333 = vector.broadcast %cst_56 : f32 to vector<8x128xf32>
      %334 = arith.maximumf %332, %333 : vector<8x128xf32>
      %cst_57 = arith.constant 5.000000e-01 : f32
      %335 = vector.broadcast %cst_57 : f32 to vector<8x128xf32>
      %336 = arith.cmpf ogt, %326, %335 : vector<8x128xf32>
      %cst_58 = arith.constant 5.000000e-01 : f32
      %337 = vector.broadcast %cst_58 : f32 to vector<8x128xf32>
      %338 = arith.cmpf ogt, %254, %337 : vector<8x128xf32>
      %cst_59 = arith.constant dense<true> : vector<8x128xi1>
      %339 = arith.xori %338, %cst_59 : vector<8x128xi1>
      %340 = arith.andi %336, %339 : vector<8x128xi1>
      %cst_60 = arith.constant dense<true> : vector<8x128xi1>
      %341 = arith.xori %336, %cst_60 : vector<8x128xi1>
      %342 = arith.andi %338, %341 : vector<8x128xi1>
      %cst_61 = arith.constant -1.000000e+02 : f32
      %343 = vector.broadcast %cst_61 : f32 to vector<8x128xf32>
      %344 = arith.maximumf %329, %343 : vector<8x128xf32>
      %cst_62 = arith.constant 0.000000e+00 : f32
      %345 = vector.broadcast %cst_62 : f32 to vector<8x128xf32>
      %346 = arith.subf %345, %344 : vector<8x128xf32>
      %cst_63 = arith.constant 0.000000e+00 : f32
      %347 = vector.broadcast %cst_63 : f32 to vector<8x128xf32>
      %348 = arith.select %336, %347, %346 : vector<8x128xi1>, vector<8x128xf32>
      %349 = arith.addf %277, %348 : vector<8x128xf32>
      %350 = arith.maximumf %316, %318 : vector<8x128xf32>
      %351 = arith.maximumf %350, %320 : vector<8x128xf32>
      %352 = arith.maximumf %351, %322 : vector<8x128xf32>
      %353 = arith.subf %316, %352 : vector<8x128xf32>
      %354 = math.exp %353 : vector<8x128xf32>
      %355 = arith.subf %318, %352 : vector<8x128xf32>
      %356 = math.exp %355 : vector<8x128xf32>
      %357 = arith.addf %354, %356 : vector<8x128xf32>
      %358 = arith.subf %320, %352 : vector<8x128xf32>
      %359 = math.exp %358 : vector<8x128xf32>
      %360 = arith.addf %357, %359 : vector<8x128xf32>
      %361 = arith.subf %322, %352 : vector<8x128xf32>
      %362 = math.exp %361 : vector<8x128xf32>
      %363 = arith.addf %360, %362 : vector<8x128xf32>
      %364 = math.log %363 : vector<8x128xf32>
      %365 = arith.addf %352, %364 : vector<8x128xf32>
      %cst_64 = arith.constant 0.000000e+00 : f32
      %366 = vector.broadcast %cst_64 : f32 to vector<8x128xf32>
      %367 = arith.select %342, %365, %366 : vector<8x128xi1>, vector<8x128xf32>
      %368 = arith.addf %296, %367 : vector<8x128xf32>
      %369 = arith.select %340, %1, %314 : vector<8x128xi1>, vector<8x128xf32>
      %370 = arith.select %340, %0, %316 : vector<8x128xi1>, vector<8x128xf32>
      %371 = arith.select %340, %0, %318 : vector<8x128xi1>, vector<8x128xf32>
      %372 = arith.select %340, %0, %320 : vector<8x128xi1>, vector<8x128xf32>
      %373 = arith.select %340, %0, %322 : vector<8x128xi1>, vector<8x128xf32>
      %374 = arith.maximumf %369, %370 : vector<8x128xf32>
      %375 = arith.maximumf %374, %373 : vector<8x128xf32>
      %376 = arith.subf %369, %375 : vector<8x128xf32>
      %377 = math.exp %376 : vector<8x128xf32>
      %378 = arith.subf %370, %375 : vector<8x128xf32>
      %379 = math.exp %378 : vector<8x128xf32>
      %380 = arith.addf %377, %379 : vector<8x128xf32>
      %381 = arith.subf %373, %375 : vector<8x128xf32>
      %382 = math.exp %381 : vector<8x128xf32>
      %383 = arith.addf %380, %382 : vector<8x128xf32>
      %384 = math.log %383 : vector<8x128xf32>
      %385 = arith.addf %375, %384 : vector<8x128xf32>
      %386 = arith.select %336, %0, %369 : vector<8x128xi1>, vector<8x128xf32>
      %387 = arith.addf %385, %334 : vector<8x128xf32>
      %388 = arith.select %336, %387, %370 : vector<8x128xi1>, vector<8x128xf32>
      %389 = arith.addf %385, %331 : vector<8x128xf32>
      %390 = arith.select %336, %389, %371 : vector<8x128xi1>, vector<8x128xf32>
      %391 = arith.addf %371, %334 : vector<8x128xf32>
      %392 = arith.select %336, %391, %372 : vector<8x128xi1>, vector<8x128xf32>
      %393 = arith.addf %372, %334 : vector<8x128xf32>
      %394 = arith.select %336, %393, %373 : vector<8x128xi1>, vector<8x128xf32>
      %395 = vector.extract_strided_slice %32 {offsets = [5, 0, 0], sizes = [1, 8, 128], strides = [1, 1, 1]} : vector<8x8x128xf32> to vector<1x8x128xf32>
      %396 = vector.shape_cast %395 : vector<1x8x128xf32> to vector<8x128xf32>
      %397 = vector.extract_strided_slice %34 {offsets = [5, 0, 0], sizes = [1, 8, 128], strides = [1, 1, 1]} : vector<8x8x128xf32> to vector<1x8x128xf32>
      %398 = vector.shape_cast %397 : vector<1x8x128xf32> to vector<8x128xf32>
      %cst_65 = arith.constant 1.000000e+00 : f32
      %399 = vector.broadcast %cst_65 : f32 to vector<8x128xf32>
      %400 = arith.subf %399, %396 : vector<8x128xf32>
      %401 = math.log %400 : vector<8x128xf32>
      %cst_66 = arith.constant -1.000000e+30 : f32
      %402 = vector.broadcast %cst_66 : f32 to vector<8x128xf32>
      %403 = arith.maximumf %401, %402 : vector<8x128xf32>
      %404 = math.log %396 : vector<8x128xf32>
      %cst_67 = arith.constant -1.000000e+30 : f32
      %405 = vector.broadcast %cst_67 : f32 to vector<8x128xf32>
      %406 = arith.maximumf %404, %405 : vector<8x128xf32>
      %cst_68 = arith.constant 5.000000e-01 : f32
      %407 = vector.broadcast %cst_68 : f32 to vector<8x128xf32>
      %408 = arith.cmpf ogt, %398, %407 : vector<8x128xf32>
      %cst_69 = arith.constant 5.000000e-01 : f32
      %409 = vector.broadcast %cst_69 : f32 to vector<8x128xf32>
      %410 = arith.cmpf ogt, %326, %409 : vector<8x128xf32>
      %cst_70 = arith.constant dense<true> : vector<8x128xi1>
      %411 = arith.xori %410, %cst_70 : vector<8x128xi1>
      %412 = arith.andi %408, %411 : vector<8x128xi1>
      %cst_71 = arith.constant dense<true> : vector<8x128xi1>
      %413 = arith.xori %408, %cst_71 : vector<8x128xi1>
      %414 = arith.andi %410, %413 : vector<8x128xi1>
      %cst_72 = arith.constant -1.000000e+02 : f32
      %415 = vector.broadcast %cst_72 : f32 to vector<8x128xf32>
      %416 = arith.maximumf %401, %415 : vector<8x128xf32>
      %cst_73 = arith.constant 0.000000e+00 : f32
      %417 = vector.broadcast %cst_73 : f32 to vector<8x128xf32>
      %418 = arith.subf %417, %416 : vector<8x128xf32>
      %cst_74 = arith.constant 0.000000e+00 : f32
      %419 = vector.broadcast %cst_74 : f32 to vector<8x128xf32>
      %420 = arith.select %408, %419, %418 : vector<8x128xi1>, vector<8x128xf32>
      %421 = arith.addf %349, %420 : vector<8x128xf32>
      %422 = arith.maximumf %388, %390 : vector<8x128xf32>
      %423 = arith.maximumf %422, %392 : vector<8x128xf32>
      %424 = arith.maximumf %423, %394 : vector<8x128xf32>
      %425 = arith.subf %388, %424 : vector<8x128xf32>
      %426 = math.exp %425 : vector<8x128xf32>
      %427 = arith.subf %390, %424 : vector<8x128xf32>
      %428 = math.exp %427 : vector<8x128xf32>
      %429 = arith.addf %426, %428 : vector<8x128xf32>
      %430 = arith.subf %392, %424 : vector<8x128xf32>
      %431 = math.exp %430 : vector<8x128xf32>
      %432 = arith.addf %429, %431 : vector<8x128xf32>
      %433 = arith.subf %394, %424 : vector<8x128xf32>
      %434 = math.exp %433 : vector<8x128xf32>
      %435 = arith.addf %432, %434 : vector<8x128xf32>
      %436 = math.log %435 : vector<8x128xf32>
      %437 = arith.addf %424, %436 : vector<8x128xf32>
      %cst_75 = arith.constant 0.000000e+00 : f32
      %438 = vector.broadcast %cst_75 : f32 to vector<8x128xf32>
      %439 = arith.select %414, %437, %438 : vector<8x128xi1>, vector<8x128xf32>
      %440 = arith.addf %368, %439 : vector<8x128xf32>
      %441 = arith.select %412, %1, %386 : vector<8x128xi1>, vector<8x128xf32>
      %442 = arith.select %412, %0, %388 : vector<8x128xi1>, vector<8x128xf32>
      %443 = arith.select %412, %0, %390 : vector<8x128xi1>, vector<8x128xf32>
      %444 = arith.select %412, %0, %392 : vector<8x128xi1>, vector<8x128xf32>
      %445 = arith.select %412, %0, %394 : vector<8x128xi1>, vector<8x128xf32>
      %446 = arith.maximumf %441, %442 : vector<8x128xf32>
      %447 = arith.maximumf %446, %445 : vector<8x128xf32>
      %448 = arith.subf %441, %447 : vector<8x128xf32>
      %449 = math.exp %448 : vector<8x128xf32>
      %450 = arith.subf %442, %447 : vector<8x128xf32>
      %451 = math.exp %450 : vector<8x128xf32>
      %452 = arith.addf %449, %451 : vector<8x128xf32>
      %453 = arith.subf %445, %447 : vector<8x128xf32>
      %454 = math.exp %453 : vector<8x128xf32>
      %455 = arith.addf %452, %454 : vector<8x128xf32>
      %456 = math.log %455 : vector<8x128xf32>
      %457 = arith.addf %447, %456 : vector<8x128xf32>
      %458 = arith.select %408, %0, %441 : vector<8x128xi1>, vector<8x128xf32>
      %459 = arith.addf %457, %406 : vector<8x128xf32>
      %460 = arith.select %408, %459, %442 : vector<8x128xi1>, vector<8x128xf32>
      %461 = arith.addf %457, %403 : vector<8x128xf32>
      %462 = arith.select %408, %461, %443 : vector<8x128xi1>, vector<8x128xf32>
      %463 = arith.addf %443, %406 : vector<8x128xf32>
      %464 = arith.select %408, %463, %444 : vector<8x128xi1>, vector<8x128xf32>
      %465 = arith.addf %444, %406 : vector<8x128xf32>
      %466 = arith.select %408, %465, %445 : vector<8x128xi1>, vector<8x128xf32>
      %467 = vector.extract_strided_slice %32 {offsets = [6, 0, 0], sizes = [1, 8, 128], strides = [1, 1, 1]} : vector<8x8x128xf32> to vector<1x8x128xf32>
      %468 = vector.shape_cast %467 : vector<1x8x128xf32> to vector<8x128xf32>
      %469 = vector.extract_strided_slice %34 {offsets = [6, 0, 0], sizes = [1, 8, 128], strides = [1, 1, 1]} : vector<8x8x128xf32> to vector<1x8x128xf32>
      %470 = vector.shape_cast %469 : vector<1x8x128xf32> to vector<8x128xf32>
      %cst_76 = arith.constant 1.000000e+00 : f32
      %471 = vector.broadcast %cst_76 : f32 to vector<8x128xf32>
      %472 = arith.subf %471, %468 : vector<8x128xf32>
      %473 = math.log %472 : vector<8x128xf32>
      %cst_77 = arith.constant -1.000000e+30 : f32
      %474 = vector.broadcast %cst_77 : f32 to vector<8x128xf32>
      %475 = arith.maximumf %473, %474 : vector<8x128xf32>
      %476 = math.log %468 : vector<8x128xf32>
      %cst_78 = arith.constant -1.000000e+30 : f32
      %477 = vector.broadcast %cst_78 : f32 to vector<8x128xf32>
      %478 = arith.maximumf %476, %477 : vector<8x128xf32>
      %cst_79 = arith.constant 5.000000e-01 : f32
      %479 = vector.broadcast %cst_79 : f32 to vector<8x128xf32>
      %480 = arith.cmpf ogt, %470, %479 : vector<8x128xf32>
      %cst_80 = arith.constant 5.000000e-01 : f32
      %481 = vector.broadcast %cst_80 : f32 to vector<8x128xf32>
      %482 = arith.cmpf ogt, %398, %481 : vector<8x128xf32>
      %cst_81 = arith.constant dense<true> : vector<8x128xi1>
      %483 = arith.xori %482, %cst_81 : vector<8x128xi1>
      %484 = arith.andi %480, %483 : vector<8x128xi1>
      %cst_82 = arith.constant dense<true> : vector<8x128xi1>
      %485 = arith.xori %480, %cst_82 : vector<8x128xi1>
      %486 = arith.andi %482, %485 : vector<8x128xi1>
      %cst_83 = arith.constant -1.000000e+02 : f32
      %487 = vector.broadcast %cst_83 : f32 to vector<8x128xf32>
      %488 = arith.maximumf %473, %487 : vector<8x128xf32>
      %cst_84 = arith.constant 0.000000e+00 : f32
      %489 = vector.broadcast %cst_84 : f32 to vector<8x128xf32>
      %490 = arith.subf %489, %488 : vector<8x128xf32>
      %cst_85 = arith.constant 0.000000e+00 : f32
      %491 = vector.broadcast %cst_85 : f32 to vector<8x128xf32>
      %492 = arith.select %480, %491, %490 : vector<8x128xi1>, vector<8x128xf32>
      %493 = arith.addf %421, %492 : vector<8x128xf32>
      %494 = arith.maximumf %460, %462 : vector<8x128xf32>
      %495 = arith.maximumf %494, %464 : vector<8x128xf32>
      %496 = arith.maximumf %495, %466 : vector<8x128xf32>
      %497 = arith.subf %460, %496 : vector<8x128xf32>
      %498 = math.exp %497 : vector<8x128xf32>
      %499 = arith.subf %462, %496 : vector<8x128xf32>
      %500 = math.exp %499 : vector<8x128xf32>
      %501 = arith.addf %498, %500 : vector<8x128xf32>
      %502 = arith.subf %464, %496 : vector<8x128xf32>
      %503 = math.exp %502 : vector<8x128xf32>
      %504 = arith.addf %501, %503 : vector<8x128xf32>
      %505 = arith.subf %466, %496 : vector<8x128xf32>
      %506 = math.exp %505 : vector<8x128xf32>
      %507 = arith.addf %504, %506 : vector<8x128xf32>
      %508 = math.log %507 : vector<8x128xf32>
      %509 = arith.addf %496, %508 : vector<8x128xf32>
      %cst_86 = arith.constant 0.000000e+00 : f32
      %510 = vector.broadcast %cst_86 : f32 to vector<8x128xf32>
      %511 = arith.select %486, %509, %510 : vector<8x128xi1>, vector<8x128xf32>
      %512 = arith.addf %440, %511 : vector<8x128xf32>
      %513 = arith.select %484, %1, %458 : vector<8x128xi1>, vector<8x128xf32>
      %514 = arith.select %484, %0, %460 : vector<8x128xi1>, vector<8x128xf32>
      %515 = arith.select %484, %0, %462 : vector<8x128xi1>, vector<8x128xf32>
      %516 = arith.select %484, %0, %464 : vector<8x128xi1>, vector<8x128xf32>
      %517 = arith.select %484, %0, %466 : vector<8x128xi1>, vector<8x128xf32>
      %518 = arith.maximumf %513, %514 : vector<8x128xf32>
      %519 = arith.maximumf %518, %517 : vector<8x128xf32>
      %520 = arith.subf %513, %519 : vector<8x128xf32>
      %521 = math.exp %520 : vector<8x128xf32>
      %522 = arith.subf %514, %519 : vector<8x128xf32>
      %523 = math.exp %522 : vector<8x128xf32>
      %524 = arith.addf %521, %523 : vector<8x128xf32>
      %525 = arith.subf %517, %519 : vector<8x128xf32>
      %526 = math.exp %525 : vector<8x128xf32>
      %527 = arith.addf %524, %526 : vector<8x128xf32>
      %528 = math.log %527 : vector<8x128xf32>
      %529 = arith.addf %519, %528 : vector<8x128xf32>
      %530 = arith.select %480, %0, %513 : vector<8x128xi1>, vector<8x128xf32>
      %531 = arith.addf %529, %478 : vector<8x128xf32>
      %532 = arith.select %480, %531, %514 : vector<8x128xi1>, vector<8x128xf32>
      %533 = arith.addf %529, %475 : vector<8x128xf32>
      %534 = arith.select %480, %533, %515 : vector<8x128xi1>, vector<8x128xf32>
      %535 = arith.addf %515, %478 : vector<8x128xf32>
      %536 = arith.select %480, %535, %516 : vector<8x128xi1>, vector<8x128xf32>
      %537 = arith.addf %516, %478 : vector<8x128xf32>
      %538 = arith.select %480, %537, %517 : vector<8x128xi1>, vector<8x128xf32>
      %539 = vector.extract_strided_slice %32 {offsets = [7, 0, 0], sizes = [1, 8, 128], strides = [1, 1, 1]} : vector<8x8x128xf32> to vector<1x8x128xf32>
      %540 = vector.shape_cast %539 : vector<1x8x128xf32> to vector<8x128xf32>
      %541 = vector.extract_strided_slice %34 {offsets = [7, 0, 0], sizes = [1, 8, 128], strides = [1, 1, 1]} : vector<8x8x128xf32> to vector<1x8x128xf32>
      %542 = vector.shape_cast %541 : vector<1x8x128xf32> to vector<8x128xf32>
      %cst_87 = arith.constant 1.000000e+00 : f32
      %543 = vector.broadcast %cst_87 : f32 to vector<8x128xf32>
      %544 = arith.subf %543, %540 : vector<8x128xf32>
      %545 = math.log %544 : vector<8x128xf32>
      %cst_88 = arith.constant -1.000000e+30 : f32
      %546 = vector.broadcast %cst_88 : f32 to vector<8x128xf32>
      %547 = arith.maximumf %545, %546 : vector<8x128xf32>
      %548 = math.log %540 : vector<8x128xf32>
      %cst_89 = arith.constant -1.000000e+30 : f32
      %549 = vector.broadcast %cst_89 : f32 to vector<8x128xf32>
      %550 = arith.maximumf %548, %549 : vector<8x128xf32>
      %cst_90 = arith.constant 5.000000e-01 : f32
      %551 = vector.broadcast %cst_90 : f32 to vector<8x128xf32>
      %552 = arith.cmpf ogt, %542, %551 : vector<8x128xf32>
      %cst_91 = arith.constant 5.000000e-01 : f32
      %553 = vector.broadcast %cst_91 : f32 to vector<8x128xf32>
      %554 = arith.cmpf ogt, %470, %553 : vector<8x128xf32>
      %cst_92 = arith.constant dense<true> : vector<8x128xi1>
      %555 = arith.xori %554, %cst_92 : vector<8x128xi1>
      %556 = arith.andi %552, %555 : vector<8x128xi1>
      %cst_93 = arith.constant dense<true> : vector<8x128xi1>
      %557 = arith.xori %552, %cst_93 : vector<8x128xi1>
      %558 = arith.andi %554, %557 : vector<8x128xi1>
      %cst_94 = arith.constant -1.000000e+02 : f32
      %559 = vector.broadcast %cst_94 : f32 to vector<8x128xf32>
      %560 = arith.maximumf %545, %559 : vector<8x128xf32>
      %cst_95 = arith.constant 0.000000e+00 : f32
      %561 = vector.broadcast %cst_95 : f32 to vector<8x128xf32>
      %562 = arith.subf %561, %560 : vector<8x128xf32>
      %cst_96 = arith.constant 0.000000e+00 : f32
      %563 = vector.broadcast %cst_96 : f32 to vector<8x128xf32>
      %564 = arith.select %552, %563, %562 : vector<8x128xi1>, vector<8x128xf32>
      %565 = arith.addf %493, %564 : vector<8x128xf32>
      %566 = arith.maximumf %532, %534 : vector<8x128xf32>
      %567 = arith.maximumf %566, %536 : vector<8x128xf32>
      %568 = arith.maximumf %567, %538 : vector<8x128xf32>
      %569 = arith.subf %532, %568 : vector<8x128xf32>
      %570 = math.exp %569 : vector<8x128xf32>
      %571 = arith.subf %534, %568 : vector<8x128xf32>
      %572 = math.exp %571 : vector<8x128xf32>
      %573 = arith.addf %570, %572 : vector<8x128xf32>
      %574 = arith.subf %536, %568 : vector<8x128xf32>
      %575 = math.exp %574 : vector<8x128xf32>
      %576 = arith.addf %573, %575 : vector<8x128xf32>
      %577 = arith.subf %538, %568 : vector<8x128xf32>
      %578 = math.exp %577 : vector<8x128xf32>
      %579 = arith.addf %576, %578 : vector<8x128xf32>
      %580 = math.log %579 : vector<8x128xf32>
      %581 = arith.addf %568, %580 : vector<8x128xf32>
      %cst_97 = arith.constant 0.000000e+00 : f32
      %582 = vector.broadcast %cst_97 : f32 to vector<8x128xf32>
      %583 = arith.select %558, %581, %582 : vector<8x128xi1>, vector<8x128xf32>
      %584 = arith.addf %512, %583 : vector<8x128xf32>
      %585 = arith.select %556, %1, %530 : vector<8x128xi1>, vector<8x128xf32>
      %586 = arith.select %556, %0, %532 : vector<8x128xi1>, vector<8x128xf32>
      %587 = arith.select %556, %0, %534 : vector<8x128xi1>, vector<8x128xf32>
      %588 = arith.select %556, %0, %536 : vector<8x128xi1>, vector<8x128xf32>
      %589 = arith.select %556, %0, %538 : vector<8x128xi1>, vector<8x128xf32>
      %590 = arith.maximumf %585, %586 : vector<8x128xf32>
      %591 = arith.maximumf %590, %589 : vector<8x128xf32>
      %592 = arith.subf %585, %591 : vector<8x128xf32>
      %593 = math.exp %592 : vector<8x128xf32>
      %594 = arith.subf %586, %591 : vector<8x128xf32>
      %595 = math.exp %594 : vector<8x128xf32>
      %596 = arith.addf %593, %595 : vector<8x128xf32>
      %597 = arith.subf %589, %591 : vector<8x128xf32>
      %598 = math.exp %597 : vector<8x128xf32>
      %599 = arith.addf %596, %598 : vector<8x128xf32>
      %600 = math.log %599 : vector<8x128xf32>
      %601 = arith.addf %591, %600 : vector<8x128xf32>
      %602 = arith.select %552, %0, %585 : vector<8x128xi1>, vector<8x128xf32>
      %603 = arith.addf %601, %550 : vector<8x128xf32>
      %604 = arith.select %552, %603, %586 : vector<8x128xi1>, vector<8x128xf32>
      %605 = arith.addf %601, %547 : vector<8x128xf32>
      %606 = arith.select %552, %605, %587 : vector<8x128xi1>, vector<8x128xf32>
      %607 = arith.addf %587, %550 : vector<8x128xf32>
      %608 = arith.select %552, %607, %588 : vector<8x128xi1>, vector<8x128xf32>
      %609 = arith.addf %588, %550 : vector<8x128xf32>
      %610 = arith.select %552, %609, %589 : vector<8x128xi1>, vector<8x128xf32>
      scf.yield %565, %584, %542, %602, %604, %606, %608, %610 : vector<8x128xf32>, vector<8x128xf32>, vector<8x128xf32>, vector<8x128xf32>, vector<8x128xf32>, vector<8x128xf32>, vector<8x128xf32>, vector<8x128xf32>
    }
    %c2_i32_1 = arith.constant 2 : i32
    %cst_2 = arith.constant 5.000000e-01 : f32
    %4 = vector.broadcast %cst_2 : f32 to vector<8x128xf32>
    %5 = arith.cmpf ogt, %3#2, %4 : vector<8x128xf32>
    %6 = arith.maximumf %3#4, %3#5 : vector<8x128xf32>
    %7 = arith.maximumf %6, %3#6 : vector<8x128xf32>
    %8 = arith.maximumf %7, %3#7 : vector<8x128xf32>
    %9 = arith.subf %3#4, %8 : vector<8x128xf32>
    %10 = math.exp %9 : vector<8x128xf32>
    %11 = arith.subf %3#5, %8 : vector<8x128xf32>
    %12 = math.exp %11 : vector<8x128xf32>
    %13 = arith.addf %10, %12 : vector<8x128xf32>
    %14 = arith.subf %3#6, %8 : vector<8x128xf32>
    %15 = math.exp %14 : vector<8x128xf32>
    %16 = arith.addf %13, %15 : vector<8x128xf32>
    %17 = arith.subf %3#7, %8 : vector<8x128xf32>
    %18 = math.exp %17 : vector<8x128xf32>
    %19 = arith.addf %16, %18 : vector<8x128xf32>
    %20 = math.log %19 : vector<8x128xf32>
    %21 = arith.addf %8, %20 : vector<8x128xf32>
    %cst_3 = arith.constant 0.000000e+00 : f32
    %22 = vector.broadcast %cst_3 : f32 to vector<8x128xf32>
    %23 = arith.select %5, %21, %22 : vector<8x128xi1>, vector<8x128xf32>
    %24 = arith.addf %3#1, %23 : vector<8x128xf32>
    %25 = arith.subf %3#0, %24 : vector<8x128xf32>
    %c0 = arith.constant 0 : index
    %c0_4 = arith.constant 0 : index
    %c0_5 = arith.constant 0 : index
    %26 = vector.load %arg3[%c0, %c0_4, %c0_5] : memref<1x8x128xf32, #tpu.memory_space<vmem>>, vector<1x8x128xf32>
    %27 = vector.shape_cast %26 : vector<1x8x128xf32> to vector<8x128xf32>
    %28 = vector.shape_cast %25 : vector<8x128xf32> to vector<1x8x128xf32>
    tpu.vector_store %arg3[%c0, %c0_4, %c0_5], %28 {strides = array<i32>} : memref<1x8x128xf32, #tpu.memory_space<vmem>>, vector<1x8x128xf32>,
    return
  }
  func.func @transform_0(%arg0: i32) -> (i32, i32, i32) {
    %c0_i32 = arith.constant 0 : i32
    %c0_i32_0 = arith.constant 0 : i32
    %c0_i32_1 = arith.constant 0 : i32
    return %arg0, %c0_i32, %c0_i32_0 : i32, i32, i32
  }
  func.func @transform_1(%arg0: i32) -> (i32, i32, i32) {
    %c0_i32 = arith.constant 0 : i32
    %c0_i32_0 = arith.constant 0 : i32
    %c0_i32_1 = arith.constant 0 : i32
    return %arg0, %c0_i32, %c0_i32_0 : i32, i32, i32
  }
  func.func @transform_2(%arg0: i32) -> (i32, i32, i32) {
    %c0_i32 = arith.constant 0 : i32
    %c0_i32_0 = arith.constant 0 : i32
    %c0_i32_1 = arith.constant 0 : i32
    return %arg0, %c0_i32, %c0_i32_0 : i32, i32, i32
  }
}

</mosaic_0001>

<bundles_post_ra>
// kernel: tpu_custom_call.1
= control target key start
LH: loop header
LB: loop body
LE: loop exit
PB: predicated region body
PF: predicated region fallthrough
CT: control target
= control target key end

     0   :  { %7 = vsyncpa [#allocation3], 0  ;;  %s1968_s0 = inlined_call_operand.hbm [shape: f32[16,8,128], index: 0, kind: input, shape index: {}]   ;;  %s1969_s1 = inlined_call_operand.hbm [shape: f32[16,8,128], index: 1, kind: input, shape index: {}]   ;;  %s1970_s2 = inlined_call_operand.hbm [shape: f32[1,8,128], index: 2, kind: output, shape index: {}]  }
   0x1   :  { %8 = vsyncpa [#allocation6], 0 }
   0x2   :  { %9 = vsyncpa [#allocation4], 0  ;;  %s1106_s9 = smov [#allocation2]   ;;  %s962_s13 = scalar_lea.hbm %s1968_s0, 2048 }
   0x3   :  { %s15_s10 = sshll.u32 %s1106_s9, 4  ;;  %p963_p0 = scmp.ne.s32.totalorder %s1968_s0, %s962_s13  ;;  %s16_s10 = int_to_ptr.vmem [resolvable:$true] %s15_s10 }
   0x4   :  { %p966_p1 = scmp.lt.u32.totalorder %s962_s13, %s1968_s0 }
   0x6   :  { %p968_p2 = pnand %p966_p1, %p963_p0 }
   0x8   :  { %971 = shalt.err (!%p968_p2)
}
   0x9   :  { %s972_s18 = scalar_lea.vmem %s16_s10, 2048  ;;  %p977_p4 = scmp.lt.s32.totalorder %s16_s10, %s16_s10 }
   0xa   :  { %p973_p3 = scmp.ne.s32.totalorder %s16_s10, %s972_s18  ;;  %p978_p5 = scmp.lt.s32.totalorder %s972_s18, %s972_s18 }
   0xc   :  { %p979_p6 = por %p978_p5, %p977_p4 }
   0xe   :  { %p980_p7 = pnand %p979_p6, %p973_p3 }
  0x10   :  { %983 = shalt.err (!%p980_p7)
}
  0x11   :  { %s1107_s19 = smov 128   ;;  %s1108_s20 = smov 8  }
  0x12   :  { %21 = dma.hbm_to_vmem [thread:$0]  %s1968_s0, 2048, %s16_s10, [#allocation3], %s1107_s19, %s1107_s19, %s1108_s20  }
  0x13   :  { %s1109_s23 = smov [#allocation5]   ;;  %s984_s27 = scalar_lea.hbm %s1969_s1, 2048 }
  0x14   :  { %s27_s24 = sshll.u32 %s1109_s23, 4  ;;  %p985_p8 = scmp.ne.s32.totalorder %s1969_s1, %s984_s27  ;;  %s28_s24 = int_to_ptr.vmem [resolvable:$true] %s27_s24 }
  0x15   :  { %p988_p9 = scmp.lt.u32.totalorder %s984_s27, %s1969_s1 }
  0x17   :  { %p990_p10 = pnand %p988_p9, %p985_p8 }
  0x19   :  { %993 = shalt.err (!%p990_p10)
}
  0x1a   :  { %s994_s4 = scalar_lea.vmem %s28_s24, 2048  ;;  %p999_p12 = scmp.lt.s32.totalorder %s28_s24, %s28_s24 }
  0x1b   :  { %p995_p11 = scmp.ne.s32.totalorder %s28_s24, %s994_s4  ;;  %p1000_p13 = scmp.lt.s32.totalorder %s994_s4, %s994_s4 }
  0x1d   :  { %p1001_p0 = por %p1000_p13, %p999_p12 }
  0x1f   :  { %p1002_p1 = pnand %p1001_p0, %p995_p11 }
  0x21   :  { %1005 = shalt.err (!%p1002_p1)
}
  0x22   :  { %33 = dma.hbm_to_vmem [thread:$0]  %s1969_s1, 2048, %s28_s24, [#allocation6], %s1107_s19, %s1107_s19, %s1108_s20  }
  0x23   :  { %1064 = dma.done.wait [#allocation3], 2048  }
  0x24   :  { %1065 = vsyncadd [#allocation3], 4294965248 }
  0x25   :  { %1066 = dma.done.wait [#allocation6], 2048  }
  0x26   :  { %1067 = vsyncadd [#allocation6], 4294965248  ;;  %v1151_v0 = vmov -1e+30   ;;  %v1153_v1 = vmov -1e+30  }
  0x27   :  { %v1155_v2 = vmov -1e+30   ;;  %v1157_v3 = vmov -1e+30   ;;  %v1159_v4 = vmov 0.0   ;;  %v1161_v5 = vmov 0.0  }
  0x28   :  { %v1163_v6 = vmov 0.0   ;;  %v1165_v7 = vmov 0.0   ;;  %s1167_s1 = smov 0  }
  0x29 LB: > { %s697_s6 = sshll.u32 %s1104_s1, 6  ;;  %v91_v11 = vmax.f32 %v1084_v3, %v1080_v2  ;;  %vm82_vm0 = vcmp.gt.f32.partialorder %v1092_v5, 0.5  ;;  %vm1110_vm2 = vmmov 1   ;;  %s45_s1 = sadd.s32 1, %s1104_s1   ;;  %s1104_s1 = sphi %s1167_s1, %s45_s1   ;;  %v1100_v7 = vphi %v1165_v7, %v2015_v7   ;;  %v1096_v6 = vphi %v1163_v6, %v2014_v6   ;;  %v1092_v5 = vphi %v1161_v5, %v2013_v5   ;;  %v1088_v4 = vphi %v1159_v4, %v2012_v4   ;;  %v1084_v3 = vphi %v1157_v3, %v2011_v3   ;;  %v1080_v2 = vphi %v1155_v2, %v2010_v2   ;;  %v1076_v1 = vphi %v1153_v1, %v2009_v1   ;;  %v1072_v0 = vphi %v1151_v0, %v2008_v0  }
  0x2a   : > { %s1187_s7 = scalar_lea.vmem [#allocation2], %s697_s6  ;;  %s1198_s8 = scalar_lea.vmem [#allocation5], %s697_s6  ;;  %vm83_vm3 = vmxor %vm82_vm0, %vm1110_vm2 }
  0x2b   : > { %v57_v8 = vld [vmem:[%s1187_s7] sm:$0xff]  ;;  %v1191_v9 = vld [vmem:[%s1187_s7 + $0x8] sm:$0xff]  ;;  %v1194_v10 = vld [vmem:[%s1187_s7 + $0x10] sm:$0xff]  ;;  %v92_v16 = vmax.f32 %v91_v11, %v1076_v1  ;;  %p42_p2 = scmp.ge.s32.totalorder %s45_s1, 2  }
  0x2c   : > { %v74_v12 = vsub.f32 1.0, %v57_v8  ;;  %776 = vlog2.f32 %v57_v8  ;;  %v144_v13 = vsub.f32 1.0, %v1191_v9  ;;  %v212_v14 = vsub.f32 1.0, %v1194_v10  ;;  %v1201_v15 = vld [vmem:[%s1198_s8] sm:$0xff]  ;;  %v1210_v18 = vld [vmem:[%s1198_s8 + $0x8] sm:$0xff]  ;;  %v1302_v63 = vld [vmem:[%s1198_s8 + $0x10] sm:$0xff] }
  0x2d   : > { %vm81_vm1 = vcmp.gt.f32.partialorder %v1201_v15, 0.5  ;;  %v1205_v17 = vmax.f32 %v92_v16, %v1072_v0  ;;  %vm151_vm7 = vcmp.gt.f32.partialorder %v1210_v18, 0.5  ;;  %v1309_v8 = vld [vmem:[%s1187_s7 + $0x18] sm:$0xff]  ;;  %vm219_vm10 = vcmp.gt.f32.partialorder %v1302_v63, 0.5  ;;  %s1111_s9 = smov (%p42_p2), [#allocation7]  }
  0x2e   : > { %778 = vlog2.f32 %v74_v12  ;;  %vm1214_vm4 = vmand %vm81_vm1, %vm83_vm3  ;;  %s652_s10 = sshll.u32 (%p42_p2), %s1111_s9, 4  ;;  %s653_s10 = int_to_ptr.vmem [resolvable:$true] %s652_s10 }
  0x2f   : > { %780 = vlog2.f32 %v144_v13  ;;  %v94_v20 = vsub.f32 %v1084_v3, %v1205_v17  ;;  %v97_v21 = vsub.f32 %v1080_v2, %v1205_v17  ;;  %v101_v22 = vsub.f32 %v1076_v1, %v1205_v17  ;;  %vm1226_vm5 = vmxor %vm81_vm1, %vm1110_vm2  ;;  %s1006_s11 = scalar_lea.vmem (%p42_p2), %s653_s10, 128  ;;  %p1011_p4 = scmp.lt.s32.totalorder (%p42_p2), %s653_s10, %s653_s10 }
  0x30   : > { %782 = vlog2.f32 %v212_v14  ;;  %v105_v23 = vsub.f32 %v1072_v0, %v1205_v17  ;;  %v1232_v25 = vsel %vm1214_vm4, 0.0, %v1088_v4  ;;  %v1236_v26 = vsel %vm1214_vm4, -1e+30, %v1084_v3  ;;  %vm1241_vm6 = vmand %vm82_vm0, %vm1226_vm5  ;;  %p1007_p3 = scmp.ne.s32.totalorder (%p42_p2), %s653_s10, %s1006_s11  ;;  %p1012_p5 = scmp.lt.s32.totalorder (%p42_p2), %s1006_s11, %s1006_s11 }
  0x31   : > { %v95_v28 = vmul.f32 1.442695, %v94_v20  ;;  %v98_v29 = vmul.f32 1.442695, %v97_v21  ;;  %v102_v30 = vmul.f32 1.442695, %v101_v22  ;;  %v119_v31 = vmax.f32 %v1232_v25, %v1236_v26  ;;  %vm1258_vm8 = vmxor %vm151_vm7, %vm1110_vm2 }
  0x32   : > { %v106_v32 = vmul.f32 1.442695, %v105_v23  ;;  %v1249_v33 = vsel %vm1214_vm4, -1e+30, %v1072_v0  ;;  %vm1266_vm9 = vmand %vm81_vm1, %vm1258_vm8  ;;  %v1276_v42 = vsel %vm1214_vm4, -1e+30, %v1080_v2  ;;  %p1013_p6 = por (%p42_p2), %p1012_p5, %p1011_p4 }
  0x33   : > { %784 = vpow2.f32 %v95_v28  ;;  %v1253_v34 = vmax.f32 %v119_v31, %v1249_v33  ;;  %v117_v54 = vsel %vm1214_vm4, -1e+30, %v1076_v1  ;;  %v280_v14 = vsub.f32 1.0, %v1309_v8  ;;  %vm1344_vm12 = vmand %vm151_vm7, %vm1226_vm5 }
  0x34   : > { %786 = vpow2.f32 %v98_v29  ;;  %vm1395_vm13 = vmand %vm219_vm10, %vm1258_vm8  ;;  %p1014_p7 = pnand (%p42_p2), %p1013_p6, %p1007_p3 }
  0x35   : > { %788 = vpow2.f32 %v102_v30  ;;  %v121_v39 = vsub.f32 %v1232_v25, %v1253_v34  ;;  %v124_v40 = vsub.f32 %v1236_v26, %v1253_v34  ;;  %v128_v43 = vsub.f32 %v1249_v33, %v1253_v34  ;;  %vm1460_vm15 = vmxor %vm219_vm10, %vm1110_vm2 }
  0x36   : > { %v777_v36 = vpop.eup %776  ;;  %790 = vpow2.f32 %v106_v32  ;;  %v1320_v32 = vld [vmem:[%s1198_s8 + $0x18] sm:$0xff]  ;;  %vm222_vm3 = vmand %vm151_vm7, %vm1460_vm15 }
  0x37   : > { %v79_v38 = vmul.f32 0.6931472, %v777_v36  ;;  %v122_v47 = vmul.f32 1.442695, %v121_v39  ;;  %v125_v49 = vmul.f32 1.442695, %v124_v40 }
  0x38   : > { %v779_v41 = vpop.eup %778  ;;  %v129_v50 = vmul.f32 1.442695, %v128_v43  ;;  %vm287_vm11 = vcmp.gt.f32.partialorder %v1320_v32, 0.5 }
  0x39   : > { %v781_v44 = vpop.eup %780  ;;  %v1280_v45 = vmul.f32 0.6931472, %v779_v41  ;;  %v1282_v46 = vmax.f32 %v79_v38, -1e+30  ;;  %792 = vpow2.f32 %v122_v47  ;;  %vm1493_vm0 = vmand %vm287_vm11, %vm1460_vm15 }
  0x3a   : > { %v783_v48 = vpop.eup %782  ;;  %v1287_v53 = vmul.f32 0.6931472, %v781_v44  ;;  %794 = vpow2.f32 %v125_v49  ;;  %vm1556_vm4 = vmxor %vm287_vm11, %vm1110_vm2 }
  0x3b   : > { %v87_v51 = vmax.f32 %v1280_v45, -100.0  ;;  %v140_v52 = vadd.f32 %v1276_v42, %v1282_v46  ;;  %796 = vpow2.f32 %v129_v50  ;;  %v1297_v58 = vmul.f32 0.6931472, %v783_v48 }
  0x3c   : > { %v155_v57 = vmax.f32 %v1287_v53, -100.0  ;;  %798 = vlog2.f32 %v280_v14  ;;  %v142_v47 = vadd.f32 %v117_v54, %v1282_v46 }
  0x3d   : > { %v88_v55 = vsub.f32 0.0, %v87_v51  ;;  %v1294_v56 = vsel %vm81_vm1, %v140_v52, %v117_v54  ;;  %v785_v59 = vpop.eup %784  ;;  %v223_v1 = vmax.f32 %v1297_v58, -100.0 }
  0x3e   : > { %v156_v61 = vsub.f32 0.0, %v155_v57  ;;  %v787_v62 = vpop.eup %786 }
  0x3f   : > { %v89_v60 = vsel %vm81_vm1, 0.0, %v88_v55  ;;  %v789_v2 = vpop.eup %788  ;;  %v100_v3 = vadd.f32 %v787_v62, %v785_v59  ;;  %v224_v12 = vsub.f32 0.0, %v223_v1 }
  0x40   : > { %v90_v0 = vadd.f32 %v1100_v7, %v89_v60  ;;  %v157_v4 = vsel %vm151_vm7, 0.0, %v156_v61  ;;  %v791_v5 = vpop.eup %790 }
  0x41   : > { %v104_v13 = vadd.f32 %v789_v2, %v100_v3  ;;  %v225_v7 = vsel %vm219_vm10, 0.0, %v224_v12 }
  0x42   : > { %v158_v11 = vadd.f32 %v157_v4, %v90_v0  ;;  %v185_v0 = vsel %vm1344_vm12, -1e+30, %v1294_v56 }
  0x43   : > { %v793_v16 = vpop.eup %792  ;;  %v108_v19 = vadd.f32 %v791_v5, %v104_v13 }
  0x44   : > { %v226_v20 = vadd.f32 %v225_v7, %v158_v11  ;;  %v795_v21 = vpop.eup %794 }
  0x45   : > { %v797_v22 = vpop.eup %796  ;;  %800 = vlog2.f32 %v108_v19  ;;  %v127_v23 = vadd.f32 %v795_v21, %v793_v16 }
  0x46   : > { %802 = vlog2.f32 %v1191_v9  ;;  %v799_v29 = vpop.eup %798  ;;  %v77_v9 = vmax.f32 %v1280_v45, -1e+30  ;;  %v135_v45 = vsel %vm81_vm1, -1e+30, %v1232_v25 }
  0x47   : > { %v131_v28 = vadd.f32 %v797_v22, %v127_v23  ;;  %v1317_v30 = vmul.f32 0.6931472, %v799_v29  ;;  %v1354_v25 = vsel %vm1344_vm12, 0.0, %v135_v45 }
  0x49   : > { %804 = vlog2.f32 %v131_v28  ;;  %v291_v38 = vmax.f32 %v1317_v30, -100.0 }
  0x4a   : > { %806 = vlog2.f32 %v1194_v10 }
  0x4b   : > { %v292_v41 = vsub.f32 0.0, %v291_v38 }
  0x4d   : > { %v293_v48 = vsel %vm287_vm11, 0.0, %v292_v41 }
  0x4e   : > { %v1334_v49 = vadd.f32 %v293_v48, %v226_v20 }
  0x4f   : > { %v801_v31 = vpop.eup %800 }
  0x50   : > { %v110_v36 = vmul.f32 0.6931472, %v801_v31  ;;  %v803_v39 = vpop.eup %802 }
  0x51   : > { %v149_v50 = vmul.f32 0.6931472, %v803_v39 }
  0x52   : > { %v1324_v40 = vadd.f32 %v110_v36, %v1205_v17  ;;  %v1413_v36 = vld [vmem:[%s1187_s7 + $0x20] sm:$0xff] }
  0x53   : > { %v805_v43 = vpop.eup %804  ;;  %v1362_v59 = vmax.f32 %v149_v50, -1e+30  ;;  %v348_v39 = vsub.f32 1.0, %v1413_v36 }
  0x54   : > { %v112_v10 = vsel %vm1241_vm6, %v1324_v40, 0.0  ;;  %v133_v44 = vmul.f32 0.6931472, %v805_v43  ;;  %v807_v52 = vpop.eup %806 }
  0x56   : > { %v134_v17 = vadd.f32 %v133_v44, %v1253_v34  ;;  %v143_v34 = vsel %vm81_vm1, %v142_v47, %v1249_v33 }
  0x57   : > { %v1374_v62 = vsel %vm1344_vm12, -1e+30, %v143_v34 }
  0x58   : > { %v136_v54 = vadd.f32 %v134_v17, %v1282_v46  ;;  %v138_v55 = vadd.f32 %v134_v17, %v77_v9  ;;  %v217_v46 = vmul.f32 0.6931472, %v807_v52 }
  0x5a   : > { %v137_v24 = vsel %vm81_vm1, %v136_v54, %v1236_v26  ;;  %v139_v57 = vsel %vm81_vm1, %v138_v55, %v1276_v42  ;;  %v1389_v3 = vmax.f32 %v217_v46, -1e+30 }
  0x5b   : > { %v159_v60 = vmax.f32 %v137_v24, %v139_v57  ;;  %v1366_v61 = vsel %vm1344_vm12, -1e+30, %v137_v24  ;;  %v1370_v33 = vsel %vm1344_vm12, -1e+30, %v139_v57 }
  0x5c   : > { %v187_v15 = vmax.f32 %v1354_v25, %v1366_v61  ;;  %v208_v26 = vadd.f32 %v1370_v33, %v1362_v59 }
  0x5d   : > { %v160_v42 = vmax.f32 %v159_v60, %v1294_v56 }
  0x5e   : > { %v188_v1 = vmax.f32 %v187_v15, %v1374_v62  ;;  %v1387_v2 = vsel %vm151_vm7, %v208_v26, %v185_v0 }
  0x5f   : > { %v161_v5 = vmax.f32 %v160_v42, %v143_v34  ;;  %v1402_v11 = vsel %vm1395_vm13, -1e+30, %v1387_v2 }
  0x60   : > { %v189_v12 = vsub.f32 %v1354_v25, %v188_v1  ;;  %v192_v13 = vsub.f32 %v1366_v61, %v188_v1  ;;  %v1408_v35 = vadd.f32 %v1402_v11, %v1389_v3  ;;  %v196_v21 = vsub.f32 %v1374_v62, %v188_v1 }
  0x61   : > { %v162_v14 = vsub.f32 %v137_v24, %v161_v5  ;;  %v165_v7 = vsub.f32 %v139_v57, %v161_v5  ;;  %v169_v16 = vsub.f32 %v1294_v56, %v161_v5  ;;  %v173_v19 = vsub.f32 %v143_v34, %v161_v5  ;;  %v1419_v34 = vld [vmem:[%s1198_s8 + $0x20] sm:$0xff] }
  0x62   : > { %v190_v20 = vmul.f32 1.442695, %v189_v12  ;;  %v193_v31 = vmul.f32 1.442695, %v192_v13  ;;  %v197_v38 = vmul.f32 1.442695, %v196_v21  ;;  %v113_v12 = vadd.f32 %v1096_v6, %v112_v10 }
  0x63   : > { %v163_v22 = vmul.f32 1.442695, %v162_v14  ;;  %v166_v23 = vmul.f32 1.442695, %v165_v7  ;;  %v170_v28 = vmul.f32 1.442695, %v169_v16 }
  0x64   : > { %v174_v29 = vmul.f32 1.442695, %v173_v19  ;;  %808 = vpow2.f32 %v190_v20  ;;  %vm355_vm14 = vcmp.gt.f32.partialorder %v1419_v34, 0.5  ;;  %v147_v13 = vmax.f32 %v1287_v53, -1e+30 }
  0x65   : > { %810 = vpow2.f32 %v163_v22  ;;  %vm1589_vm5 = vmand %vm355_vm14, %vm1556_vm4 }
  0x66   : > { %812 = vpow2.f32 %v166_v23  ;;  %vm1652_vm8 = vmxor %vm355_vm14, %vm1110_vm2 }
  0x67   : > { %814 = vpow2.f32 %v170_v28  ;;  %vm358_vm12 = vmand %vm287_vm11, %vm1652_vm8 }
  0x68   : > { %816 = vpow2.f32 %v174_v29 }
  0x69   : > { %818 = vpow2.f32 %v193_v31 }
  0x6a   : > { %820 = vpow2.f32 %v197_v38 }
  0x6b   : > { %822 = vlog2.f32 %v348_v39 }
  0x6e   : > { %v809_v56 = vpop.eup %808 }
  0x6f   : > { %v811_v41 = vpop.eup %810 }
  0x70   : > { %v813_v43 = vpop.eup %812 }
  0x71   : > { %v815_v9 = vpop.eup %814  ;;  %v168_v44 = vadd.f32 %v813_v43, %v811_v41 }
  0x72   : > { %v817_v47 = vpop.eup %816 }
  0x73   : > { %v819_v48 = vpop.eup %818  ;;  %v172_v17 = vadd.f32 %v815_v9, %v168_v44 }
  0x74   : > { %v821_v45 = vpop.eup %820  ;;  %v195_v50 = vadd.f32 %v819_v48, %v809_v56 }
  0x75   : > { %v823_v51 = vpop.eup %822  ;;  %v176_v52 = vadd.f32 %v817_v47, %v172_v17 }
  0x76   : > { %v199_v54 = vadd.f32 %v821_v45, %v195_v50  ;;  %v1416_v55 = vmul.f32 0.6931472, %v823_v51 }
  0x77   : > { %824 = vlog2.f32 %v176_v52 }
  0x78   : > { %826 = vlog2.f32 %v199_v54  ;;  %v359_v24 = vmax.f32 %v1416_v55, -100.0  ;;  %v1511_v54 = vld [vmem:[%s1187_s7 + $0x28] sm:$0xff] }
  0x79   : > { %828 = vlog2.f32 %v1309_v8  ;;  %v210_v8 = vadd.f32 %v185_v0, %v1362_v59 }
  0x7a   : > { %v360_v57 = vsub.f32 0.0, %v359_v24 }
  0x7b   : > { %v211_v53 = vsel %vm151_vm7, %v210_v8, %v1374_v62 }
  0x7c   : > { %v361_v46 = vsel %vm355_vm14, 0.0, %v360_v57  ;;  %v416_v57 = vsub.f32 1.0, %v1511_v54 }
  0x7d   : > { %v1427_v60 = vadd.f32 %v361_v46, %v1334_v49  ;;  %v203_v49 = vsel %vm151_vm7, -1e+30, %v1354_v25 }
  0x7e   : > { %v1449_v10 = vsel %vm1395_vm13, 0.0, %v203_v49 }
  0x81   : > { %v825_v15 = vpop.eup %824 }
  0x82   : > { %v827_v26 = vpop.eup %826  ;;  %v178_v42 = vmul.f32 0.6931472, %v825_v15 }
  0x83   : > { %v201_v14 = vmul.f32 0.6931472, %v827_v26  ;;  %v829_v19 = vpop.eup %828 }
  0x84   : > { %v179_v7 = vadd.f32 %v178_v42, %v161_v5  ;;  %v285_v0 = vmul.f32 0.6931472, %v829_v19 }
  0x85   : > { %v202_v16 = vadd.f32 %v201_v14, %v188_v1 }
  0x86   : > { %v180_v20 = vsel %vm1266_vm9, %v179_v7, 0.0  ;;  %v1487_v29 = vmax.f32 %v285_v0, -1e+30 }
  0x87   : > { %v1441_v27 = vadd.f32 %v180_v20, %v113_v12  ;;  %v204_v40 = vadd.f32 %v202_v16, %v1362_v59  ;;  %v206_v6 = vadd.f32 %v202_v16, %v147_v13 }
  0x89   : > { %v205_v25 = vsel %vm151_vm7, %v204_v40, %v1366_v61  ;;  %v207_v37 = vsel %vm151_vm7, %v206_v6, %v1370_v33  ;;  %v1474_v33 = vsel %vm1395_vm13, -1e+30, %v211_v53  ;;  %v1517_v40 = vld [vmem:[%s1198_s8 + $0x28] sm:$0xff]  ;;  %vm290_vm7 = vmand %vm219_vm10, %vm1556_vm4 }
  0x8a   : > { %v227_v62 = vmax.f32 %v205_v25, %v207_v37  ;;  %v1466_v1 = vsel %vm1395_vm13, -1e+30, %v205_v25  ;;  %v1470_v61 = vsel %vm1395_vm13, -1e+30, %v207_v37  ;;  %vm423_vm1 = vcmp.gt.f32.partialorder %v1517_v40, 0.5 }
  0x8b   : > { %v255_v5 = vmax.f32 %v1449_v10, %v1466_v1  ;;  %v276_v21 = vadd.f32 %v1470_v61, %v1389_v3  ;;  %v279_v18 = vsel %vm219_vm10, %v1408_v35, %v1474_v33  ;;  %vm1685_vm9 = vmand %vm423_vm1, %vm1652_vm8 }
  0x8c   : > { %v228_v22 = vmax.f32 %v227_v62, %v1387_v2 }
  0x8d   : > { %v256_v23 = vmax.f32 %v255_v5, %v1474_v33  ;;  %v1485_v28 = vsel %vm219_vm10, %v276_v21, %v1402_v11  ;;  %v215_v21 = vmax.f32 %v1297_v58, -1e+30 }
  0x8e   : > { %v229_v31 = vmax.f32 %v228_v22, %v211_v53  ;;  %v1500_v38 = vsel %vm1493_vm0, -1e+30, %v1485_v28 }
  0x8f   : > { %v257_v39 = vsub.f32 %v1449_v10, %v256_v23  ;;  %v260_v11 = vsub.f32 %v1466_v1, %v256_v23  ;;  %v1506_v56 = vadd.f32 %v1500_v38, %v1487_v29  ;;  %v264_v48 = vsub.f32 %v1474_v33, %v256_v23 }
  0x90   : > { %v230_v41 = vsub.f32 %v205_v25, %v229_v31  ;;  %v233_v43 = vsub.f32 %v207_v37, %v229_v31  ;;  %v237_v9 = vsub.f32 %v1387_v2, %v229_v31  ;;  %v241_v44 = vsub.f32 %v211_v53, %v229_v31 }
  0x91   : > { %v258_v47 = vmul.f32 1.442695, %v257_v39  ;;  %v261_v52 = vmul.f32 1.442695, %v260_v11  ;;  %v265_v24 = vmul.f32 1.442695, %v264_v48 }
  0x92   : > { %v231_v17 = vmul.f32 1.442695, %v230_v41  ;;  %v234_v45 = vmul.f32 1.442695, %v233_v43  ;;  %v238_v50 = vmul.f32 1.442695, %v237_v9 }
  0x93   : > { %v242_v51 = vmul.f32 1.442695, %v241_v44  ;;  %830 = vpow2.f32 %v258_v47 }
  0x94   : > { %832 = vpow2.f32 %v231_v17 }
  0x95   : > { %834 = vpow2.f32 %v234_v45 }
  0x96   : > { %836 = vpow2.f32 %v238_v50 }
  0x97   : > { %838 = vpow2.f32 %v242_v51 }
  0x98   : > { %840 = vpow2.f32 %v261_v52 }
  0x99   : > { %842 = vpow2.f32 %v265_v24 }
  0x9a   : > { %844 = vlog2.f32 %v416_v57 }
  0x9d   : > { %v831_v2 = vpop.eup %830 }
  0x9e   : > { %v833_v46 = vpop.eup %832 }
  0x9f   : > { %v835_v15 = vpop.eup %834 }
  0xa0   : > { %v837_v26 = vpop.eup %836  ;;  %v236_v42 = vadd.f32 %v835_v15, %v833_v46 }
  0xa1   : > { %v839_v12 = vpop.eup %838 }
  0xa2   : > { %v841_v13 = vpop.eup %840  ;;  %v240_v14 = vadd.f32 %v837_v26, %v236_v42 }
  0xa3   : > { %v843_v8 = vpop.eup %842  ;;  %v263_v7 = vadd.f32 %v841_v13, %v831_v2 }
  0xa4   : > { %v845_v16 = vpop.eup %844  ;;  %v244_v49 = vadd.f32 %v839_v12, %v240_v14 }
  0xa5   : > { %v267_v19 = vadd.f32 %v843_v8, %v263_v7  ;;  %v1514_v20 = vmul.f32 0.6931472, %v845_v16  ;;  %v1607_v8 = vld [vmem:[%s1187_s7 + $0x30] sm:$0xff] }
  0xa6   : > { %846 = vlog2.f32 %v244_v49 }
  0xa7   : > { %848 = vlog2.f32 %v267_v19  ;;  %v427_v6 = vmax.f32 %v1514_v20, -100.0  ;;  %v484_v19 = vsub.f32 1.0, %v1607_v8 }
  0xa8   : > { %850 = vlog2.f32 %v1413_v36  ;;  %v271_v36 = vsel %vm219_vm10, -1e+30, %v1449_v10 }
  0xa9   : > { %v428_v53 = vsub.f32 0.0, %v427_v6  ;;  %v1545_v59 = vsel %vm1493_vm0, 0.0, %v271_v36 }
  0xab   : > { %v429_v25 = vsel %vm423_vm1, 0.0, %v428_v53 }
  0xac   : > { %v1525_v37 = vadd.f32 %v429_v25, %v1427_v60 }
  0xb0   : > { %v847_v0 = vpop.eup %846 }
  0xb1   : > { %v849_v62 = vpop.eup %848  ;;  %v246_v5 = vmul.f32 0.6931472, %v847_v0 }
  0xb2   : > { %v269_v22 = vmul.f32 0.6931472, %v849_v62  ;;  %v851_v41 = vpop.eup %850 }
  0xb3   : > { %v247_v39 = vadd.f32 %v246_v5, %v229_v31 }
  0xb4   : > { %v270_v11 = vadd.f32 %v269_v22, %v256_v23  ;;  %v353_v23 = vmul.f32 0.6931472, %v851_v41 }
  0xb5   : > { %v248_v60 = vsel %vm222_vm3, %v247_v39, 0.0 }
  0xb6   : > { %v1536_v43 = vadd.f32 %v248_v60, %v1441_v27  ;;  %v272_v9 = vadd.f32 %v270_v11, %v1389_v3  ;;  %v274_v58 = vadd.f32 %v270_v11, %v215_v21  ;;  %v1583_v45 = vmax.f32 %v353_v23, -1e+30 }
  0xb8   : > { %v273_v10 = vsel %vm219_vm10, %v272_v9, %v1466_v1  ;;  %v275_v27 = vsel %vm219_vm10, %v274_v58, %v1470_v61  ;;  %v1570_v61 = vsel %vm1493_vm0, -1e+30, %v279_v18  ;;  %v1613_v9 = vld [vmem:[%s1198_s8 + $0x30] sm:$0xff] }
  0xb9   : > { %v295_v35 = vmax.f32 %v273_v10, %v275_v27  ;;  %v1562_v33 = vsel %vm1493_vm0, -1e+30, %v273_v10  ;;  %v1566_v1 = vsel %vm1493_vm0, -1e+30, %v275_v27  ;;  %vm491_vm6 = vcmp.gt.f32.partialorder %v1613_v9, 0.5 }
  0xba   : > { %v323_v31 = vmax.f32 %v1545_v59, %v1562_v33  ;;  %v344_v44 = vadd.f32 %v1566_v1, %v1487_v29  ;;  %v347_v63 = vsel %vm287_vm11, %v1506_v56, %v1570_v61  ;;  %vm1789_vm15 = vmxor %vm491_vm6, %vm1110_vm2 }
  0xbb   : > { %v296_v47 = vmax.f32 %v295_v35, %v1485_v28 }
  0xbc   : > { %v324_v48 = vmax.f32 %v323_v31, %v1570_v61  ;;  %v1581_v17 = vsel %vm287_vm11, %v344_v44, %v1500_v38  ;;  %v283_v44 = vmax.f32 %v1317_v30, -1e+30 }
  0xbd   : > { %v297_v50 = vmax.f32 %v296_v47, %v279_v18  ;;  %v1596_v51 = vsel %vm1589_vm5, -1e+30, %v1581_v17 }
  0xbe   : > { %v325_v38 = vsub.f32 %v1545_v59, %v324_v48  ;;  %v328_v52 = vsub.f32 %v1562_v33, %v324_v48  ;;  %v1602_v24 = vadd.f32 %v1596_v51, %v1583_v45  ;;  %v332_v42 = vsub.f32 %v1570_v61, %v324_v48 }
  0xbf   : > { %v298_v57 = vsub.f32 %v273_v10, %v297_v50  ;;  %v301_v2 = vsub.f32 %v275_v27, %v297_v50  ;;  %v305_v46 = vsub.f32 %v1485_v28, %v297_v50  ;;  %v309_v15 = vsub.f32 %v279_v18, %v297_v50 }
  0xc0   : > { %v326_v26 = vmul.f32 1.442695, %v325_v38  ;;  %v329_v16 = vmul.f32 1.442695, %v328_v52  ;;  %v333_v49 = vmul.f32 1.442695, %v332_v42 }
  0xc1   : > { %v299_v12 = vmul.f32 1.442695, %v298_v57  ;;  %v302_v13 = vmul.f32 1.442695, %v301_v2  ;;  %v306_v14 = vmul.f32 1.442695, %v305_v46 }
  0xc2   : > { %v310_v7 = vmul.f32 1.442695, %v309_v15  ;;  %852 = vpow2.f32 %v326_v26 }
  0xc3   : > { %854 = vpow2.f32 %v299_v12 }
  0xc4   : > { %856 = vpow2.f32 %v302_v13 }
  0xc5   : > { %858 = vpow2.f32 %v306_v14 }
  0xc6   : > { %860 = vpow2.f32 %v310_v7 }
  0xc7   : > { %862 = vpow2.f32 %v329_v16 }
  0xc8   : > { %864 = vpow2.f32 %v333_v49 }
  0xc9   : > { %866 = vlog2.f32 %v484_v19 }
  0xcc   : > { %v853_v28 = vpop.eup %852 }
  0xcd   : > { %v855_v6 = vpop.eup %854 }
  0xce   : > { %v857_v53 = vpop.eup %856 }
  0xcf   : > { %v859_v25 = vpop.eup %858  ;;  %v304_v0 = vadd.f32 %v857_v53, %v855_v6 }
  0xd0   : > { %v861_v62 = vpop.eup %860 }
  0xd1   : > { %v863_v5 = vpop.eup %862  ;;  %v308_v21 = vadd.f32 %v859_v25, %v304_v0 }
  0xd2   : > { %v865_v22 = vpop.eup %864  ;;  %v331_v39 = vadd.f32 %v863_v5, %v853_v28 }
  0xd3   : > { %v867_v11 = vpop.eup %866  ;;  %v312_v36 = vadd.f32 %v861_v62, %v308_v21 }
  0xd4   : > { %v335_v41 = vadd.f32 %v865_v22, %v331_v39  ;;  %v1610_v60 = vmul.f32 0.6931472, %v867_v11  ;;  %v1703_v22 = vld [vmem:[%s1187_s7 + $0x38] sm:$0xff] }
  0xd5   : > { %868 = vlog2.f32 %v312_v36 }
  0xd6   : > { %870 = vlog2.f32 %v335_v41  ;;  %v495_v58 = vmax.f32 %v1610_v60, -100.0  ;;  %v552_v41 = vsub.f32 1.0, %v1703_v22 }
  0xd7   : > { %872 = vlog2.f32 %v1511_v54  ;;  %v339_v54 = vsel %vm287_vm11, -1e+30, %v1545_v59 }
  0xd8   : > { %v496_v18 = vsub.f32 0.0, %v495_v58  ;;  %v1641_v3 = vsel %vm1589_vm5, 0.0, %v339_v54 }
  0xda   : > { %v497_v10 = vsel %vm491_vm6, 0.0, %v496_v18 }
  0xdb   : > { %v1621_v27 = vadd.f32 %v497_v10, %v1525_v37 }
  0xdf   : > { %v869_v23 = vpop.eup %868 }
  0xe0   : > { %v871_v35 = vpop.eup %870  ;;  %v314_v31 = vmul.f32 0.6931472, %v869_v23 }
  0xe1   : > { %v337_v47 = vmul.f32 0.6931472, %v871_v35  ;;  %v873_v57 = vpop.eup %872 }
  0xe2   : > { %v315_v38 = vadd.f32 %v314_v31, %v297_v50 }
  0xe3   : > { %v338_v52 = vadd.f32 %v337_v47, %v324_v48  ;;  %v421_v48 = vmul.f32 0.6931472, %v873_v57 }
  0xe4   : > { %v316_v37 = vsel %vm290_vm7, %v315_v38, 0.0 }
  0xe5   : > { %v1632_v2 = vadd.f32 %v316_v37, %v1536_v43  ;;  %v340_v46 = vadd.f32 %v338_v52, %v1487_v29  ;;  %v342_v30 = vadd.f32 %v338_v52, %v283_v44  ;;  %v1679_v13 = vmax.f32 %v421_v48, -1e+30 }
  0xe7   : > { %v341_v59 = vsel %vm287_vm11, %v340_v46, %v1562_v33  ;;  %v343_v43 = vsel %vm287_vm11, %v342_v30, %v1566_v1  ;;  %v1666_v1 = vsel %vm1589_vm5, -1e+30, %v347_v63  ;;  %vm1738_vm11 = vmxor %vm423_vm1, %vm1110_vm2 }
  0xe8   : > { %v363_v56 = vmax.f32 %v341_v59, %v343_v43  ;;  %v1658_v61 = vsel %vm1589_vm5, -1e+30, %v341_v59  ;;  %v1662_v33 = vsel %vm1589_vm5, -1e+30, %v343_v43  ;;  %v415_v32 = vsel %vm355_vm14, %v1602_v24, %v1666_v1  ;;  %vm1774_vm13 = vmand %vm491_vm6, %vm1738_vm11 }
  0xe9   : > { %v391_v50 = vmax.f32 %v1641_v3, %v1658_v61  ;;  %v412_v15 = vadd.f32 %v1662_v33, %v1583_v45  ;;  %vm426_vm3 = vmand %vm355_vm14, %vm1738_vm11 }
  0xea   : > { %v364_v26 = vmax.f32 %v363_v56, %v1581_v17 }
  0xeb   : > { %v392_v42 = vmax.f32 %v391_v50, %v1666_v1  ;;  %v1677_v12 = vsel %vm355_vm14, %v412_v15, %v1596_v51  ;;  %v351_v15 = vmax.f32 %v1416_v55, -1e+30 }
  0xec   : > { %v365_v14 = vmax.f32 %v364_v26, %v347_v63  ;;  %v1692_v7 = vsel %vm1685_vm9, -1e+30, %v1677_v12 }
  0xed   : > { %v393_v51 = vsub.f32 %v1641_v3, %v392_v42  ;;  %v396_v16 = vsub.f32 %v1658_v61, %v392_v42  ;;  %v1698_v49 = vadd.f32 %v1692_v7, %v1679_v13  ;;  %v400_v0 = vsub.f32 %v1666_v1, %v392_v42 }
  0xee   : > { %v366_v19 = vsub.f32 %v341_v59, %v365_v14  ;;  %v369_v28 = vsub.f32 %v343_v43, %v365_v14  ;;  %v373_v6 = vsub.f32 %v1581_v17, %v365_v14  ;;  %v377_v53 = vsub.f32 %v347_v63, %v365_v14 }
  0xef   : > { %v394_v25 = vmul.f32 1.442695, %v393_v51  ;;  %v397_v11 = vmul.f32 1.442695, %v396_v16  ;;  %v401_v36 = vmul.f32 1.442695, %v400_v0 }
  0xf0   : > { %v367_v62 = vmul.f32 1.442695, %v366_v19  ;;  %v370_v5 = vmul.f32 1.442695, %v369_v28  ;;  %v374_v21 = vmul.f32 1.442695, %v373_v6 }
  0xf1   : > { %v378_v39 = vmul.f32 1.442695, %v377_v53  ;;  %874 = vpow2.f32 %v394_v25  ;;  %v458_v53 = vsel %vm1685_vm9, -1e+30, %v415_v32 }
  0xf2   : > { %876 = vpow2.f32 %v367_v62  ;;  %v1768_v0 = vsel %vm423_vm1, %v1698_v49, %v458_v53 }
  0xf3   : > { %878 = vpow2.f32 %v370_v5  ;;  %v1709_v5 = vld [vmem:[%s1198_s8 + $0x38] sm:$0xff]  }
  0xf4   : > { %880 = vpow2.f32 %v374_v21  ;;  %v1997_v46 = vmov %v1709_v5 }
  0xf5   : > { %882 = vpow2.f32 %v378_v39  ;;  %vm559_vm10 = vcmp.gt.f32.partialorder %v1997_v46, 0.5 }
  0xf6   : > { %884 = vpow2.f32 %v397_v11  ;;  %vm1818_vm0 = vmand %vm559_vm10, %vm1789_vm15 }
  0xf7   : > { %886 = vpow2.f32 %v401_v36 }
  0xf8   : > { %888 = vlog2.f32 %v552_v41 }
  0xfb   : > { %v875_v17 = vpop.eup %874 }
  0xfc   : > { %v877_v58 = vpop.eup %876 }
  0xfd   : > { %v879_v18 = vpop.eup %878 }
  0xfe   : > { %v881_v10 = vpop.eup %880  ;;  %v372_v23 = vadd.f32 %v879_v18, %v877_v58 }
  0xff   : > { %v883_v35 = vpop.eup %882 }
 0x100   : > { %v885_v31 = vpop.eup %884  ;;  %v376_v44 = vadd.f32 %v881_v10, %v372_v23 }
 0x101   : > { %v887_v47 = vpop.eup %886  ;;  %v399_v38 = vadd.f32 %v885_v31, %v875_v17 }
 0x102   : > { %v889_v52 = vpop.eup %888  ;;  %v380_v54 = vadd.f32 %v883_v35, %v376_v44 }
 0x103   : > { %v403_v57 = vadd.f32 %v887_v47, %v399_v38  ;;  %v1706_v37 = vmul.f32 0.6931472, %v889_v52 }
 0x104   : > { %890 = vlog2.f32 %v380_v54 }
 0x105   : > { %892 = vlog2.f32 %v403_v57  ;;  %v563_v30 = vmax.f32 %v1706_v37, -100.0 }
 0x106   : > { %894 = vlog2.f32 %v1607_v8  ;;  %v407_v8 = vsel %vm355_vm14, -1e+30, %v1641_v3 }
 0x107   : > { %v564_v63 = vsub.f32 0.0, %v563_v30  ;;  %v454_v3 = vsel %vm1685_vm9, 0.0, %v407_v8 }
 0x109   : > { %v565_v59 = vsel %vm559_vm10, 0.0, %v564_v63 }
 0x10a   : > { %v1717_v43 = vadd.f32 %v565_v59, %v1621_v27  }
 0x10e   : > { %v891_v48 = vpop.eup %890 }
 0x10f   : > { %v893_v56 = vpop.eup %892  ;;  %v382_v50 = vmul.f32 0.6931472, %v891_v48 }
 0x110   : > { %v405_v26 = vmul.f32 0.6931472, %v893_v56  ;;  %v895_v19 = vpop.eup %894 }
 0x111   : > { %v383_v51 = vadd.f32 %v382_v50, %v365_v14 }
 0x112   : > { %v406_v16 = vadd.f32 %v405_v26, %v392_v42  ;;  %v489_v42 = vmul.f32 0.6931472, %v895_v19 }
 0x113   : > { %v384_v27 = vsel %vm358_vm12, %v383_v51, 0.0 }
 0x114   : > { %v1728_v28 = vadd.f32 %v384_v27, %v1632_v2  ;;  %v408_v6 = vadd.f32 %v406_v16, %v1583_v45  ;;  %v410_v55 = vadd.f32 %v406_v16, %v351_v15  ;;  %v1784_v39 = vmax.f32 %v489_v42, -1e+30 }
 0x116   : > { %v409_v45 = vsel %vm355_vm14, %v408_v6, %v1658_v61  ;;  %v411_v2 = vsel %vm355_vm14, %v410_v55, %v1662_v33  ;;  %v475_v61 = vsel %vm423_vm1, -1e+30, %v454_v3  ;;  %vm494_vm14 = vmand %vm423_vm1, %vm1789_vm15 }
 0x117   : > { %v431_v24 = vmax.f32 %v409_v45, %v411_v2  ;;  %v1752_v1 = vsel %vm1685_vm9, -1e+30, %v409_v45  ;;  %v1756_v14 = vsel %vm1685_vm9, -1e+30, %v411_v2  ;;  %v1795_v36 = vsel %vm1774_vm13, 0.0, %v475_v61 }
 0x118   : > { %v459_v25 = vmax.f32 %v454_v3, %v1752_v1  ;;  %v480_v33 = vadd.f32 %v1756_v14, %v1679_v13  ;;  %v543_v18 = vsel %vm491_vm6, -1e+30, %v1795_v36 }
 0x119   : > { %v432_v62 = vmax.f32 %v431_v24, %v1677_v12  ;;  %v1829_v59 = vsel %vm1818_vm0, 0.0, %v543_v18 }
 0x11a   : > { %v460_v5 = vmax.f32 %v459_v25, %v458_v53  ;;  %v1782_v21 = vsel %vm423_vm1, %v480_v33, %v1692_v7  ;;  %v1805_v7 = vsel %vm1774_vm13, -1e+30, %v1768_v0  ;;  %v1839_v50 = vsel %vm559_vm10, -1e+30, %v1829_v59  }
 0x11b   : > { %v433_v11 = vmax.f32 %v432_v62, %v415_v32  ;;  %v1800_v41 = vsel %vm1774_vm13, -1e+30, %v1782_v21  ;;  %v419_v25 = vmax.f32 %v1514_v20, -1e+30 }
 0x11c   : > { %v461_v17 = vsub.f32 %v454_v3, %v460_v5  ;;  %v464_v58 = vsub.f32 %v1752_v1, %v460_v5  ;;  %v550_v10 = vadd.f32 %v1800_v41, %v1784_v39  ;;  %v468_v52 = vsub.f32 %v458_v53, %v460_v5 }
 0x11d   : > { %v434_v23 = vsub.f32 %v409_v45, %v433_v11  ;;  %v437_v35 = vsub.f32 %v411_v2, %v433_v11  ;;  %v441_v31 = vsub.f32 %v1677_v12, %v433_v11  ;;  %v445_v44 = vsub.f32 %v415_v32, %v433_v11 }
 0x11e   : > { %v462_v38 = vmul.f32 1.442695, %v461_v17  ;;  %v1825_v54 = vsel %vm491_vm6, %v550_v10, %v1805_v7  ;;  %v465_v56 = vmul.f32 1.442695, %v464_v58  ;;  %v469_v15 = vmul.f32 1.442695, %v468_v52 }
 0x11f   : > { %v435_v57 = vmul.f32 1.442695, %v434_v23  ;;  %v438_v30 = vmul.f32 1.442695, %v437_v35  ;;  %v442_v63 = vmul.f32 1.442695, %v441_v31 }
 0x120   : > { %v446_v12 = vmul.f32 1.442695, %v445_v44  ;;  %896 = vpow2.f32 %v462_v38  ;;  %v1834_v48 = vsel %vm1818_vm0, -1e+30, %v1825_v54 }
 0x121   : > { %898 = vpow2.f32 %v435_v57 }
 0x122   : > { %900 = vpow2.f32 %v438_v30 }
 0x123   : > { %902 = vpow2.f32 %v442_v63 }
 0x124   : > { %904 = vpow2.f32 %v446_v12 }
 0x125   : > { %906 = vpow2.f32 %v465_v56 }
 0x126   : > { %908 = vpow2.f32 %v469_v15 }
 0x12a   : > { %v897_v26 = vpop.eup %896 }
 0x12b   : > { %v899_v51 = vpop.eup %898 }
 0x12c   : > { %v901_v16 = vpop.eup %900 }
 0x12d   : > { %v903_v8 = vpop.eup %902  ;;  %v440_v19 = vadd.f32 %v901_v16, %v899_v51 }
 0x12e   : > { %v905_v27 = vpop.eup %904 }
 0x12f   : > { %v907_v6 = vpop.eup %906  ;;  %v444_v55 = vadd.f32 %v903_v8, %v440_v19 }
 0x130   : > { %v909_v32 = vpop.eup %908  ;;  %v467_v3 = vadd.f32 %v907_v6, %v897_v26 }
 0x131   : > { %v448_v45 = vadd.f32 %v905_v27, %v444_v55 }
 0x132   : > { %v471_v2 = vadd.f32 %v909_v32, %v467_v3 }
 0x133   : > { %910 = vlog2.f32 %v448_v45 }
 0x134   : > { %912 = vlog2.f32 %v471_v2 }
 0x135   : > { %914 = vlog2.f32 %v1703_v22 }
 0x13d   : > { %v911_v42 = vpop.eup %910 }
 0x13e   : > { %v913_v24 = vpop.eup %912  ;;  %v450_v53 = vmul.f32 0.6931472, %v911_v42 }
 0x13f   : > { %v473_v61 = vmul.f32 0.6931472, %v913_v24  ;;  %v915_v33 = vpop.eup %914 }
 0x140   : > { %v451_v62 = vadd.f32 %v450_v53, %v433_v11  ;;  %v557_v23 = vmul.f32 0.6931472, %v915_v33 }
 0x141   : > { %v474_v17 = vadd.f32 %v473_v61, %v460_v5 }
 0x142   : > { %v452_v58 = vsel %vm426_vm3, %v451_v62, 0.0  ;;  %v1863_v35 = vmax.f32 %v557_v23, -1e+30  ;;  %v487_v62 = vmax.f32 %v1610_v60, -1e+30 }
 0x143   : > { %v1848_v18 = vadd.f32 %v452_v58, %v1728_v28  ;;  %v476_v22 = vadd.f32 %v474_v17, %v1679_v13  ;;  %v478_v10 = vadd.f32 %v474_v17, %v419_v25 }
 0x145   : > { %v477_v20 = vsel %vm423_vm1, %v476_v22, %v1752_v1  ;;  %v479_v34 = vsel %vm423_vm1, %v478_v10, %v1756_v14  ;;  %vm561_vm1 = vmxor %vm559_vm10, %vm1110_vm2 }
 0x146   : > { %v499_v29 = vmax.f32 %v477_v20, %v479_v34  ;;  %v523_v5 = vsel %vm1774_vm13, -1e+30, %v477_v20  ;;  %v524_v28 = vsel %vm1774_vm13, -1e+30, %v479_v34  ;;  %vm562_vm4 = vmand %vm491_vm6, %vm561_vm1 }
 0x147   : > { %v527_v11 = vmax.f32 %v1795_v36, %v523_v5  ;;  %v548_v13 = vadd.f32 %v524_v28, %v1784_v39 }
 0x148   : > { %v500_v31 = vmax.f32 %v499_v29, %v1782_v21 }
 0x149   : > { %v528_v1 = vmax.f32 %v527_v11, %v1805_v7  ;;  %v1870_v14 = vsel %vm491_vm6, %v548_v13, %v1800_v41 }
 0x14a   : > { %v501_v44 = vmax.f32 %v500_v31, %v1768_v0  ;;  %v593_v4 = vsel %vm1818_vm0, -1e+30, %v1870_v14 }
 0x14b   : > { %v529_v38 = vsub.f32 %v1795_v36, %v528_v1  ;;  %v532_v52 = vsub.f32 %v523_v5, %v528_v1  ;;  %v536_v57 = vsub.f32 %v1805_v7, %v528_v1  ;;  %v618_v30 = vadd.f32 %v593_v4, %v1863_v35 }
 0x14c   : > { %v502_v63 = vsub.f32 %v477_v20, %v501_v44  ;;  %v505_v12 = vsub.f32 %v479_v34, %v501_v44  ;;  %v509_v56 = vsub.f32 %v1782_v21, %v501_v44  ;;  %v513_v41 = vsub.f32 %v1768_v0, %v501_v44 }
 0x14d   : > { %v530_v15 = vmul.f32 1.442695, %v529_v38  ;;  %v1884_v0 = vsel %vm559_vm10, %v618_v30, %v1834_v48   ;;  %v533_v7 = vmul.f32 1.442695, %v532_v52  ;;  %v537_v19 = vmul.f32 1.442695, %v536_v57 }
 0x14e   : > { %v2006_v26 = vmov %v1884_v0  ;;  %v503_v51 = vmul.f32 1.442695, %v502_v63  ;;  %v506_v16 = vmul.f32 1.442695, %v505_v12  ;;  %v510_v36 = vmul.f32 1.442695, %v509_v56 }
 0x14f   : > { %v514_v8 = vmul.f32 1.442695, %v513_v41  ;;  %916 = vpow2.f32 %v530_v15 }
 0x150   : > { %918 = vpow2.f32 %v503_v51 }
 0x151   : > { %920 = vpow2.f32 %v506_v16 }
 0x152   : > { %922 = vpow2.f32 %v510_v36 }
 0x153   : > { %924 = vpow2.f32 %v514_v8 }
 0x154   : > { %926 = vpow2.f32 %v533_v7 }
 0x155   : > { %928 = vpow2.f32 %v537_v19 }
 0x159   : > { %v917_v21 = vpop.eup %916 }
 0x15a   : > { %v919_v27 = vpop.eup %918 }
 0x15b   : > { %v921_v6 = vpop.eup %920 }
 0x15c   : > { %v923_v55 = vpop.eup %922  ;;  %v508_v32 = vadd.f32 %v921_v6, %v919_v27 }
 0x15d   : > { %v925_v3 = vpop.eup %924 }
 0x15e   : > { %v927_v0 = vpop.eup %926  ;;  %v512_v45 = vadd.f32 %v923_v55, %v508_v32 }
 0x15f   : > { %v929_v2 = vpop.eup %928  ;;  %v535_v42 = vadd.f32 %v927_v0, %v917_v21  ;;  %v555_v0 = vmax.f32 %v1706_v37, -1e+30 }
 0x160   : > { %v516_v24 = vadd.f32 %v925_v3, %v512_v45 }
 0x161   : > { %v539_v53 = vadd.f32 %v929_v2, %v535_v42 }
 0x162   : > { %930 = vlog2.f32 %v516_v24 }
 0x163   : > { %932 = vlog2.f32 %v539_v53 }
 0x16c   : > { %v931_v25 = vpop.eup %930 }
 0x16d   : > { %v933_v61 = vpop.eup %932  ;;  %v518_v33 = vmul.f32 0.6931472, %v931_v25 }
 0x16e   : > { %v541_v17 = vmul.f32 0.6931472, %v933_v61 }
 0x16f   : > { %v519_v58 = vadd.f32 %v518_v33, %v501_v44 }
 0x170   : > { %v542_v22 = vadd.f32 %v541_v17, %v528_v1 }
 0x171   : > { %v520_v10 = vsel %vm494_vm14, %v519_v58, 0.0 }
 0x172   : > { %v521_v23 = vadd.f32 %v520_v10, %v1848_v18  ;;  %v544_v20 = vadd.f32 %v542_v22, %v1784_v39  ;;  %v546_v34 = vadd.f32 %v542_v22, %v487_v62 }
 0x174   : > { %v545_v29 = vsel %vm491_vm6, %v544_v20, %v523_v5  ;;  %v547_v60 = vsel %vm491_vm6, %v546_v34, %v524_v28 }
 0x175   : > { %v567_v11 = vmax.f32 %v545_v29, %v547_v60  ;;  %v591_v40 = vsel %vm1818_vm0, -1e+30, %v545_v29  ;;  %v592_v49 = vsel %vm1818_vm0, -1e+30, %v547_v60 }
 0x176   : > { %v595_v13 = vmax.f32 %v1829_v59, %v591_v40  ;;  %v616_v18 = vadd.f32 %v592_v49, %v1863_v35 }
 0x177   : > { %v568_v39 = vmax.f32 %v567_v11, %v1870_v14 }
 0x178   : > { %v596_v31 = vmax.f32 %v595_v13, %v1834_v48  ;;  %v1907_v1 = vsel %vm559_vm10, %v616_v18, %v593_v4  }
 0x179   : > { %v2007_v44 = vmov %v1907_v1  ;;  %v569_v5 = vmax.f32 %v568_v39, %v1825_v54 }
 0x17a   : > { %v597_v28 = vsub.f32 %v1829_v59, %v596_v31  ;;  %v600_v38 = vsub.f32 %v591_v40, %v596_v31  ;;  %v604_v47 = vsub.f32 %v1834_v48, %v596_v31 }
 0x17b   : > { %v570_v52 = vsub.f32 %v545_v29, %v569_v5  ;;  %v573_v57 = vsub.f32 %v547_v60, %v569_v5  ;;  %v577_v30 = vsub.f32 %v1870_v14, %v569_v5  ;;  %v581_v63 = vsub.f32 %v1825_v54, %v569_v5 }
 0x17c   : > { %v598_v12 = vmul.f32 1.442695, %v597_v28  ;;  %v601_v1 = vmul.f32 1.442695, %v600_v38  ;;  %v605_v4 = vmul.f32 1.442695, %v604_v47 }
 0x17d   : > { %v571_v56 = vmul.f32 1.442695, %v570_v52  ;;  %v574_v41 = vmul.f32 1.442695, %v573_v57  ;;  %v578_v15 = vmul.f32 1.442695, %v577_v30 }
 0x17e   : > { %v582_v51 = vmul.f32 1.442695, %v581_v63  ;;  %934 = vpow2.f32 %v598_v12 }
 0x17f   : > { %936 = vpow2.f32 %v571_v56 }
 0x180   : > { %938 = vpow2.f32 %v574_v41 }
 0x181   : > { %940 = vpow2.f32 %v578_v15 }
 0x182   : > { %942 = vpow2.f32 %v582_v51 }
 0x183   : > { %944 = vpow2.f32 %v601_v1  ;;  %v2009_v1 = vmov %v2007_v44 }
 0x184   : > { %946 = vpow2.f32 %v605_v4  ;;  %v2012_v4 = vmov %v1839_v50 }
 0x188   : > { %v935_v59 = vpop.eup %934 }
 0x189   : > { %v937_v48 = vpop.eup %936 }
 0x18a   : > { %v939_v16 = vpop.eup %938 }
 0x18b   : > { %v941_v14 = vpop.eup %940  ;;  %v576_v36 = vadd.f32 %v939_v16, %v937_v48 }
 0x18c   : > { %v943_v54 = vpop.eup %942 }
 0x18d   : > { %v945_v8 = vpop.eup %944  ;;  %v580_v7 = vadd.f32 %v941_v14, %v576_v36 }
 0x18e   : > { %v947_v19 = vpop.eup %946  ;;  %v603_v21 = vadd.f32 %v945_v8, %v935_v59 }
 0x18f   : > { %v584_v27 = vadd.f32 %v943_v54, %v580_v7  ;;  %v2015_v7 = vmov %v1717_v43 }
 0x190   : > { %v607_v6 = vadd.f32 %v947_v19, %v603_v21 }
 0x191   : > { %948 = vlog2.f32 %v584_v27 }
 0x192   : > { %950 = vlog2.f32 %v607_v6 }
 0x19b   : > { %v949_v55 = vpop.eup %948 }
 0x19c   : > { %v951_v32 = vpop.eup %950  ;;  %v586_v3 = vmul.f32 0.6931472, %v949_v55 }
 0x19d   : > { %v609_v45 = vmul.f32 0.6931472, %v951_v32 }
 0x19e   : > { %v587_v2 = vadd.f32 %v586_v3, %v569_v5  ;;  %v2013_v5 = vmov %v1997_v46  ;;  %44 = sbr.rel (!%p42_p2) target bundleno = 41 (0x29), region = 45 }
 0x19f   : > { %v610_v42 = vadd.f32 %v609_v45, %v596_v31 }
 0x1a0   : > { %v588_v24 = vsel %vm562_vm4, %v587_v2, 0.0 }
 0x1a1   : > { %v589_v53 = vadd.f32 %v588_v24, %v521_v23   ;;  %v612_v25 = vadd.f32 %v610_v42, %v1863_v35  ;;  %v614_v61 = vadd.f32 %v610_v42, %v555_v0  ;;  %v2008_v0 = vmov %v2006_v26 }
 0x1a3   : > { %v613_v33 = vsel %vm559_vm10, %v612_v25, %v591_v40   ;;  %v615_v62 = vsel %vm559_vm10, %v614_v61, %v592_v49   ;;  %v2014_v6 = vmov %v589_v53 }
 0x1a4   : > { %v2010_v2 = vmov %v615_v62  ;;  %v2011_v3 = vmov %v613_v33  ;;  %v621_v9 = vmax.f32 (%p42_p2), %v613_v33, %v615_v62 }
 0x1a6   :  { %v622_v37 = vmax.f32 %v621_v9, %v2007_v44 }
 0x1a8   :  { %v623_v35 = vmax.f32 %v622_v37, %v2006_v26 }
 0x1aa   :  { %v624_v17 = vsub.f32 %v613_v33, %v623_v35  ;;  %v627_v58 = vsub.f32 %v615_v62, %v623_v35  ;;  %v631_v50 = vsub.f32 %v2007_v44, %v623_v35  ;;  %v635_v22 = vsub.f32 %v2006_v26, %v623_v35 }
 0x1ac   :  { %v625_v10 = vmul.f32 1.442695, %v624_v17  ;;  %v628_v23 = vmul.f32 1.442695, %v627_v58  ;;  %v632_v20 = vmul.f32 1.442695, %v631_v50 }
 0x1ad   :  { %v636_v34 = vmul.f32 1.442695, %v635_v22 }
 0x1ae   :  { %952 = vpow2.f32 %v625_v10 }
 0x1af   :  { %954 = vpow2.f32 %v628_v23 }
 0x1b0   :  { %956 = vpow2.f32 %v632_v20 }
 0x1b1   :  { %958 = vpow2.f32 %v636_v34 }
 0x1b8   :  { %v953_v29 = vpop.eup %952 }
 0x1b9   :  { %v955_v60 = vpop.eup %954 }
 0x1ba   :  { %v957_v11 = vpop.eup %956  ;;  %v630_v40 = vadd.f32 %v955_v60, %v953_v29 }
 0x1bb   :  { %v959_v49 = vpop.eup %958 }
 0x1bc   :  { %v634_v13 = vadd.f32 %v957_v11, %v630_v40 }
 0x1be   :  { %v638_v18 = vadd.f32 %v959_v49, %v634_v13 }
 0x1c0   :  { %960 = vlog2.f32 %v638_v18 }
 0x1ca   :  { %v961_v39 = vpop.eup %960 }
 0x1cb   :  { %v640_v31 = vmul.f32 0.6931472, %v961_v39 }
 0x1cd   :  { %v641_v44 = vadd.f32 %v640_v31, %v623_v35 }
 0x1cf   :  { %v642_v26 = vsel %vm559_vm10, %v641_v44, 0.0 }
 0x1d0   :  { %v643_v5 = vadd.f32 %v642_v26, %v589_v53 }
 0x1d2   :  { %v644_v28 = vsub.f32 %v1717_v43, %v643_v5 }
 0x1d4   :  { %645 = vst [vmem:[#allocation7] sm:$0xff] %v644_v28 }
 0x1d5   :  { %1017 = shalt.err (!%p1014_p7)
}
 0x1d6   :  { %s1018_s14 = scalar_lea.hbm %s1970_s2, 128 }
 0x1d7   :  { %p1019_p8 = scmp.ne.s32.totalorder %s1970_s2, %s1018_s14  ;;  %p1022_p9 = scmp.lt.u32.totalorder %s1018_s14, %s1970_s2 }
 0x1d9   :  { %p1024_p10 = pnand %p1022_p9, %p1019_p8 }
 0x1db   :  { %1027 = shalt.err (!%p1024_p10)
}
 0x1dc   :  { %655 = dma.vmem_to_hbm [thread:$0]  %s653_s10, 128, %s1970_s2, [#allocation4]  }
 0x1dd   :  { %1068 = dma.done.wait [#allocation4], 128  }
 0x1de   :  { %1069 = vsyncadd [#allocation4], 4294967168 }
 0x1df   :  { %659 = vsyncpa [#allocation3], 1 }
 0x1e0   :  { %660 = vsyncpa [#allocation6], 1 }
 0x1e1   :  { %661 = vsyncpa [#allocation4], 1 }

</bundles_post_ra>
